<compile_context>
chip_gen: v7x
topology: tpu7x:2x2x1
jax: 0.10.0
libtpu: 0.0.40
codegen_flags: <defaults>
</compile_context>

<pallas_src>
import functools
import math

import jax
import jax.numpy as jnp
from jax import lax
from jax.experimental import pallas as pl
from jax.experimental.pallas import tpu as pltpu


def vqa_kernel(
    # inputs (one batch tile per grid step; weights use constant index_maps)
    emb_ref,                 # (1, seq*TB, E)  bf16, time-major flattened tile
    img_ref,                 # (TB, H)         bf16
    w_i_ref, w_h_ref,        # (E, 3H) / (H, 3H) bf16  fused GRU weights
    b_i_ref, b_hn_ref,       # (1, 3H) / (1, H)  f32   fused GRU biases
    n1_w_ref, n1_b_ref,      # (H, 2H) bf16 / (1, 2H) f32  NonLinear(q)
    n2_w_ref, n2_b_ref,      # (H, 2H) bf16 / (1, 2H) f32  NonLinear(vHat)
    cf_w_ref, cf_b_ref,      # (H, 2H) bf16 / (1, 2H) f32  classifier NonLinear
    cls_w_ref,               # (H, C)  bf16   final classifier matrix
    # output
    out_ref,                 # (TB, C)
    # scratch
    xproj_ref,               # (seq*TB, 3H)    bf16
    *, unroll,
):
    tb, H = img_ref.shape
    seq = xproj_ref.shape[0] // tb

    # (1) Hoisted input projection: one (seq*TB, E) @ (E, 3H) matmul off the
    # serial GRU critical path, input-side (and r/z hidden-side) biases
    # pre-folded.  Stored bf16 (review: halves VMEM + vst traffic; gate adds
    # below still happen in f32).
    x_all = emb_ref[0]                                           # (seq*TB, E)
    xproj_ref[...] = (
        jnp.dot(x_all, w_i_ref[...], preferred_element_type=jnp.float32)
        + b_i_ref[...]
    ).astype(xproj_ref.dtype)

    # (2) Fused hidden-to-hidden weights: one (TB, H) @ (H, 3H) push per step.
    w_h = w_h_ref[...]                                           # bf16
    b_hn = jnp.broadcast_to(b_hn_ref[...], (tb, H))              # hoisted (no in-loop CSE)

    def gru_step(t, h):
        off = pl.multiple_of(t * tb, tb)                         # aligned sublane slice
        xp = xproj_ref[pl.ds(off, tb), :]                        # (TB, 3H) bf16 (promotes)
        hp = jnp.dot(h.astype(jnp.bfloat16), w_h,
                     preferred_element_type=jnp.float32)         # (TB, 3H) f32
        r = jax.nn.sigmoid(xp[:, :H] + hp[:, :H])
        z = jax.nn.sigmoid(xp[:, H:2 * H] + hp[:, H:2 * H])
        n = jnp.tanh(xp[:, 2 * H:] + r * (hp[:, 2 * H:] + b_hn))
        return (1.0 - z) * n + z * h                             # f32 hidden state

    h0 = jnp.zeros((tb, H), jnp.float32)
    q = lax.fori_loop(0, seq, gru_step, h0, unroll=unroll)
    # TODO(synk): the reference QuestionEmbedding returns the full GRU output
    # sequence; the downstream elementwise product is shape-inconsistent in
    # the source, so the final-timestep hidden state is used as q.

    # NonLinear(x) = tanh(x@W1+b1) * sigmoid(x@W2+b2); W1/W2 (and b1/b2) are
    # concatenated along the output dim so each block is a single lane-dense
    # (·,H)@(H,2H) matmul followed by static lane slicing.
    def nonlinear(x_bf16, w_ref, b_ref):
        zz = jnp.dot(x_bf16, w_ref[...], preferred_element_type=jnp.float32)
        zz = zz + b_ref[...]
        return jnp.tanh(zz[:, :H]) * jax.nn.sigmoid(zz[:, H:])

    # TODO(synk): the reference ImageAttention computes softmax attention
    # weights that are never used and effectively returns its input; the dead
    # branch (and its weights) is elided here, so vHat = image.
    v = img_ref[...]                                             # (TB, H) bf16

    hq = nonlinear(q.astype(jnp.bfloat16), n1_w_ref, n1_b_ref)
    hv = nonlinear(v, n2_w_ref, n2_b_ref)
    h_fused = (hq * hv).astype(jnp.bfloat16)
    fh = nonlinear(h_fused, cf_w_ref, cf_b_ref).astype(jnp.bfloat16)

    # Fused classifier head: (TB, H) @ (H, C) + sigmoid, lane-dense store.
    out_ref[...] = jax.nn.sigmoid(
        jnp.dot(fh, cls_w_ref[...], preferred_element_type=jnp.float32)
    ).astype(out_ref.dtype)


def _vmem_bytes(shape, dtype):
    """Padded-tile VMEM size of one buffer (sublane/lane rounding)."""
    item = jnp.dtype(dtype).itemsize
    shape = (1,) * max(0, 2 - len(shape)) + tuple(shape)
    sub = 8 * max(1, 4 // item)                 # f32: 8 rows, bf16: 16 rows
    rows = -(-shape[-2] // sub) * sub
    cols = -(-shape[-1] // 128) * 128
    lead = math.prod(shape[:-2])
    return lead * rows * cols * item


def init_params(key, vocab, emb_dim, hidden, num_classes):
    keys = iter(jax.random.split(key, 32))

    def w(shape, scale=0.05):
        return jax.random.normal(next(keys), shape, jnp.float32) * scale

    p = {}
    p["emb_table"] = w((vocab + 1, emb_dim), 0.1)
    # GRU weights (stored transposed: (in, out)), PyTorch gate order r, z, n.
    p["w_ir"], p["w_iz"], p["w_in"] = (w((emb_dim, hidden)) for _ in range(3))
    p["w_hr"], p["w_hz"], p["w_hn"] = (w((hidden, hidden)) for _ in range(3))
    p["b_ir"], p["b_iz"], p["b_in"] = (w((1, hidden)) for _ in range(3))
    p["b_hr"], p["b_hz"], p["b_hn"] = (w((1, hidden)) for _ in range(3))
    # NOTE: the reference ImageAttention's weights never influence the output
    # (its attention result is unused), so they are not materialized at all.
    # nlin1 / nlin2 (NonLinear blocks applied to q and vHat)
    p["n1_w1"], p["n1_b1"] = w((hidden, hidden)), w((1, hidden))
    p["n1_w2"], p["n1_b2"] = w((hidden, hidden)), w((1, hidden))
    p["n2_w1"], p["n2_b1"] = w((hidden, hidden)), w((1, hidden))
    p["n2_w2"], p["n2_b2"] = w((hidden, hidden)), w((1, hidden))
    # Classifier: NonLinear + bias-free linear to num_classes
    p["cls_f_w1"], p["cls_f_b1"] = w((hidden, hidden)), w((1, hidden))
    p["cls_f_w2"], p["cls_f_b2"] = w((hidden, hidden)), w((1, hidden))
    p["cls_w"] = w((hidden, num_classes))
    return p


def vqa_forward(question, image, params, num_classes, *,
                batch_tile=16, out_dtype=jnp.float32):
    hidden = params["w_hr"].shape[0]
    emb_dim = params["emb_table"].shape[1]
    batch, seq = question.shape

    # Feature dims must be lane-dense (multiples of 128) so every matmul and
    # store is unmasked and MXU-friendly. Production sizes (emb 300, hidden
    # 512, classes 3129) should be zero-padded to 384 / 512 / 3200 in the
    # wrapper and the padded class columns sliced off before any loss
    # (padded classifier columns emit sigmoid(0)=0.5).
    assert emb_dim % 128 == 0 and hidden % 128 == 0
    assert num_classes % 128 == 0  # TODO(synk): pad 3129 -> 3200 for production.

    # Batch tile: 16 keeps bf16 sublane packing aligned (16 rows per tile).
    tb = min(batch_tile, batch)
    assert batch % tb == 0         # TODO(synk): pad ragged batches to a tile multiple.
    nb = batch // tb

    # Embedding lookup + per-tile time-major flatten stay in plain-JAX glue.
    # Pre-flattening here keeps the in-kernel matmul input free of a bf16
    # (16,128)-tile-crossing reshape (review item).
    emb = jnp.take(params["emb_table"], question, axis=0)        # (B, S, E)
    emb = emb.reshape(nb, tb, seq, emb_dim)
    emb = jnp.transpose(emb, (0, 2, 1, 3)).reshape(nb, seq * tb, emb_dim)
    emb = emb.astype(jnp.bfloat16)
    image = image.astype(jnp.bfloat16)

    # Fuse GRU weights (r, z, n) into single lane-dense matmuls; fold the
    # input-side biases together with the r/z hidden-side biases (they only
    # ever add); b_hn stays separate (it sits inside the r * (...) term).
    w_i = jnp.concatenate([params["w_ir"], params["w_iz"], params["w_in"]],
                          axis=1).astype(jnp.bfloat16)                    # (E, 3H)
    w_h = jnp.concatenate([params["w_hr"], params["w_hz"], params["w_hn"]],
                          axis=1).astype(jnp.bfloat16)                    # (H, 3H)
    b_i = jnp.concatenate([params["b_ir"] + params["b_hr"],
                           params["b_iz"] + params["b_hz"],
                           params["b_in"]], axis=1).astype(jnp.float32)   # (1, 3H)
    b_hn = params["b_hn"].astype(jnp.float32)                             # (1, H)

    def fuse_nl(w1, b1, w2, b2):
        return (jnp.concatenate([w1, w2], axis=1).astype(jnp.bfloat16),
                jnp.concatenate([b1, b2], axis=1).astype(jnp.float32))

    n1_w, n1_b = fuse_nl(params["n1_w1"], params["n1_b1"],
                         params["n1_w2"], params["n1_b2"])
    n2_w, n2_b = fuse_nl(params["n2_w1"], params["n2_b1"],
                         params["n2_w2"], params["n2_b2"])
    cf_w, cf_b = fuse_nl(params["cls_f_w1"], params["cls_f_b1"],
                         params["cls_f_w2"], params["cls_f_b2"])
    cls_w = params["cls_w"].astype(jnp.bfloat16)                          # (H, C)

    enc_args = (emb, image, w_i, w_h, b_i, b_hn,
                n1_w, n1_b, n2_w, n2_b, cf_w, cf_b, cls_w)

    const2d = lambda b: (0, 0)
    in_specs = (
        [pl.BlockSpec((1, seq * tb, emb_dim), lambda b: (b, 0, 0)),  # emb tile
         pl.BlockSpec((tb, hidden), lambda b: (b, 0))]               # image tile
        + [pl.BlockSpec(a.shape, const2d) for a in enc_args[2:]]     # weights: grid-invariant
    )
    out_specs = pl.BlockSpec((tb, num_classes), lambda b: (b, 0))

    # Explicit scoped-VMEM budget (review item): padded operand tiles x2
    # (double-buffering) + output tile x2 + scratch + headroom, capped well
    # under v7x's 64 MiB physical VMEM.
    vmem_limit = min(
        2 * sum(_vmem_bytes(a.shape, a.dtype) for a in enc_args)
        + 2 * _vmem_bytes((tb, num_classes), out_dtype)
        + _vmem_bytes((seq * tb, 3 * hidden), jnp.bfloat16)
        + (8 << 20),
        56 << 20)

    # Full unroll for short sequences (LLO visibility); cap for long ones to
    # bound code size / vreg live ranges (review item).
    unroll = seq if seq <= 32 else 4

    return pl.pallas_call(
        functools.partial(vqa_kernel, unroll=unroll),
        out_shape=jax.ShapeDtypeStruct((batch, num_classes), out_dtype),
        grid_spec=pltpu.PrefetchScalarGridSpec(
            num_scalar_prefetch=0,
            grid=(nb,),
            in_specs=in_specs,
            out_specs=out_specs,
            scratch_shapes=[pltpu.VMEM((seq * tb, 3 * hidden), jnp.bfloat16)]),
        compiler_params=pltpu.CompilerParams(
            dimension_semantics=("parallel",),
            vmem_limit_bytes=int(vmem_limit)),
    )(*enc_args)


if __name__ == "__main__":
    # Small, lane-dense shapes consistent with the module's forward semantics.
    batch, seq = 32, 8
    vocab = 50          # "input_size" of QuestionEmbedding
    emb_dim = 128       # stands in for 300 (pad to 384 in production)
    hidden = 128        # stands in for 512
    num_classes = 256   # stands in for 3129 (pad to 3200 in production)

    key = jax.random.PRNGKey(0)
    k_q, k_img, k_p = jax.random.split(key, 3)
    question = jax.random.randint(k_q, (batch, seq), 0, vocab + 1, dtype=jnp.int32)
    image = jax.random.normal(k_img, (batch, hidden), jnp.float32)
    params = init_params(k_p, vocab, emb_dim, hidden, num_classes)

    fwd = jax.jit(functools.partial(vqa_forward, num_classes=num_classes))
    out = jax.block_until_ready(fwd(question, image, params))
    assert out.shape == (batch, num_classes)
    assert bool(jnp.all(jnp.isfinite(out)))
    print("KERNEL_OK")
</pallas_src>

<mosaic_0001>
module attributes {stable_mosaic.version = 11 : i64} {
  func.func @vqa_kernel(%arg0: i32, %arg1: memref<1x128x128xbf16, #tpu.memory_space<vmem>>, %arg2: memref<16x128xbf16, #tpu.memory_space<vmem>>, %arg3: memref<128x384xbf16, #tpu.memory_space<vmem>>, %arg4: memref<128x384xbf16, #tpu.memory_space<vmem>>, %arg5: memref<1x384xf32, #tpu.memory_space<vmem>>, %arg6: memref<1x128xf32, #tpu.memory_space<vmem>>, %arg7: memref<128x256xbf16, #tpu.memory_space<vmem>>, %arg8: memref<1x256xf32, #tpu.memory_space<vmem>>, %arg9: memref<128x256xbf16, #tpu.memory_space<vmem>>, %arg10: memref<1x256xf32, #tpu.memory_space<vmem>>, %arg11: memref<128x256xbf16, #tpu.memory_space<vmem>>, %arg12: memref<1x256xf32, #tpu.memory_space<vmem>>, %arg13: memref<128x256xbf16, #tpu.memory_space<vmem>>, %arg14: memref<16x256xf32, #tpu.memory_space<vmem>>, %arg15: memref<128x384xbf16, #tpu.memory_space<vmem>>) attributes {dimension_semantics = [#tpu.dimension_semantics<parallel>], iteration_bounds = array<i64: 2>, scalar_prefetch = 0 : i64, scratch_operands = 1 : i64, tpu.core_type = #tpu.core_type<tc>, window_params = [{transform_indices = @transform_0, window_bounds = array<i64: 1, 128, 128>}, {transform_indices = @transform_1, window_bounds = array<i64: 16, 128>}, {pipeline_mode = #tpu.pipeline_mode<synchronous>, transform_indices = @transform_2, window_bounds = array<i64: 128, 384>}, {pipeline_mode = #tpu.pipeline_mode<synchronous>, transform_indices = @transform_3, window_bounds = array<i64: 128, 384>}, {pipeline_mode = #tpu.pipeline_mode<synchronous>, transform_indices = @transform_4, window_bounds = array<i64: 1, 384>}, {pipeline_mode = #tpu.pipeline_mode<synchronous>, transform_indices = @transform_5, window_bounds = array<i64: 1, 128>}, {pipeline_mode = #tpu.pipeline_mode<synchronous>, transform_indices = @transform_6, window_bounds = array<i64: 128, 256>}, {pipeline_mode = #tpu.pipeline_mode<synchronous>, transform_indices = @transform_7, window_bounds = array<i64: 1, 256>}, {pipeline_mode = #tpu.pipeline_mode<synchronous>, transform_indices = @transform_8, window_bounds = array<i64: 128, 256>}, {pipeline_mode = #tpu.pipeline_mode<synchronous>, transform_indices = @transform_9, window_bounds = array<i64: 1, 256>}, {pipeline_mode = #tpu.pipeline_mode<synchronous>, transform_indices = @transform_10, window_bounds = array<i64: 128, 256>}, {pipeline_mode = #tpu.pipeline_mode<synchronous>, transform_indices = @transform_11, window_bounds = array<i64: 1, 256>}, {pipeline_mode = #tpu.pipeline_mode<synchronous>, transform_indices = @transform_12, window_bounds = array<i64: 128, 256>}, {transform_indices = @transform_13, window_bounds = array<i64: 16, 256>}]} {
    %c0 = arith.constant 0 : index
    %c0_0 = arith.constant 0 : index
    %c0_1 = arith.constant 0 : index
    %0 = vector.load %arg1[%c0, %c0_0, %c0_1] : memref<1x128x128xbf16, #tpu.memory_space<vmem>>, vector<1x128x128xbf16>
    %1 = vector.shape_cast %0 : vector<1x128x128xbf16> to vector<128x128xbf16>
    %c0_2 = arith.constant 0 : index
    %c0_3 = arith.constant 0 : index
    %2 = vector.load %arg3[%c0_2, %c0_3] : memref<128x384xbf16, #tpu.memory_space<vmem>>, vector<128x384xbf16>
    %cst = arith.constant dense<0.000000e+00> : vector<128x384xf32>
    %3 = tpu.matmul %1, %2, %cst {dimension_numbers = #tpu.dot_dimension_numbers<[1], [0], [0], [1], [0, 0, 1, 1], [], []>} : vector<128x128xbf16>, vector<128x384xbf16>, vector<128x384xf32> -> vector<128x384xf32>
    %c0_4 = arith.constant 0 : index
    %c0_5 = arith.constant 0 : index
    %4 = vector.load %arg5[%c0_4, %c0_5] : memref<1x384xf32, #tpu.memory_space<vmem>>, vector<1x384xf32>
    %5 = vector.broadcast %4 : vector<1x384xf32> to vector<128x384xf32>
    %6 = arith.addf %3, %5 : vector<128x384xf32>
    %7 = arith.truncf %6 : vector<128x384xf32> to vector<128x384xbf16>
    %c0_6 = arith.constant 0 : index
    %c0_7 = arith.constant 0 : index
    %8 = vector.load %arg15[%c0_6, %c0_7] : memref<128x384xbf16, #tpu.memory_space<vmem>>, vector<128x384xbf16>
    tpu.vector_store %arg15[%c0_6, %c0_7], %7 {strides = array<i32>} : memref<128x384xbf16, #tpu.memory_space<vmem>>, vector<128x384xbf16>,
    %c0_8 = arith.constant 0 : index
    %c0_9 = arith.constant 0 : index
    %9 = vector.load %arg4[%c0_8, %c0_9] : memref<128x384xbf16, #tpu.memory_space<vmem>>, vector<128x384xbf16>
    %c0_10 = arith.constant 0 : index
    %c0_11 = arith.constant 0 : index
    %10 = vector.load %arg6[%c0_10, %c0_11] : memref<1x128xf32, #tpu.memory_space<vmem>>, vector<1x128xf32>
    %11 = vector.shape_cast %10 : vector<1x128xf32> to vector<1x128xf32>
    %12 = vector.broadcast %11 : vector<1x128xf32> to vector<16x128xf32>
    %cst_12 = arith.constant 0.000000e+00 : f32
    %13 = vector.broadcast %cst_12 : f32 to vector<16x128xf32>
    %c0_i32 = arith.constant 0 : i32
    %c16_i32 = arith.constant 16 : i32
    %14 = arith.muli %c0_i32, %c16_i32 : i32
    %15 = tpu.assume_multiple %14, 16 : i32
    %16 = arith.index_cast %15 : i32 to index
    %c0_13 = arith.constant 0 : index
    %17 = vector.load %arg15[%16, %c0_13] : memref<128x384xbf16, #tpu.memory_space<vmem>>, vector<16x384xbf16>
    %18 = arith.truncf %13 : vector<16x128xf32> to vector<16x128xbf16>
    %cst_14 = arith.constant dense<0.000000e+00> : vector<16x384xf32>
    %19 = tpu.matmul %18, %9, %cst_14 {dimension_numbers = #tpu.dot_dimension_numbers<[1], [0], [0], [1], [0, 0, 1, 1], [], []>} : vector<16x128xbf16>, vector<128x384xbf16>, vector<16x384xf32> -> vector<16x384xf32>
    %20 = vector.extract_strided_slice %17 {offsets = [0, 0], sizes = [16, 128], strides = [1, 1]} : vector<16x384xbf16> to vector<16x128xbf16>
    %21 = vector.extract_strided_slice %19 {offsets = [0, 0], sizes = [16, 128], strides = [1, 1]} : vector<16x384xf32> to vector<16x128xf32>
    %22 = arith.extf %20 : vector<16x128xbf16> to vector<16x128xf32>
    %23 = arith.addf %22, %21 : vector<16x128xf32>
    %24 = arith.negf %23 : vector<16x128xf32>
    %25 = math.exp %24 : vector<16x128xf32>
    %cst_15 = arith.constant 1.000000e+00 : f32
    %26 = vector.broadcast %cst_15 : f32 to vector<16x128xf32>
    %27 = arith.addf %26, %25 : vector<16x128xf32>
    %28 = arith.divf %26, %27 : vector<16x128xf32>
    %29 = vector.extract_strided_slice %17 {offsets = [0, 128], sizes = [16, 128], strides = [1, 1]} : vector<16x384xbf16> to vector<16x128xbf16>
    %30 = vector.extract_strided_slice %19 {offsets = [0, 128], sizes = [16, 128], strides = [1, 1]} : vector<16x384xf32> to vector<16x128xf32>
    %31 = arith.extf %29 : vector<16x128xbf16> to vector<16x128xf32>
    %32 = arith.addf %31, %30 : vector<16x128xf32>
    %33 = arith.negf %32 : vector<16x128xf32>
    %34 = math.exp %33 : vector<16x128xf32>
    %cst_16 = arith.constant 1.000000e+00 : f32
    %35 = vector.broadcast %cst_16 : f32 to vector<16x128xf32>
    %36 = arith.addf %35, %34 : vector<16x128xf32>
    %37 = arith.divf %35, %36 : vector<16x128xf32>
    %38 = vector.extract_strided_slice %17 {offsets = [0, 256], sizes = [16, 128], strides = [1, 1]} : vector<16x384xbf16> to vector<16x128xbf16>
    %39 = vector.extract_strided_slice %19 {offsets = [0, 256], sizes = [16, 128], strides = [1, 1]} : vector<16x384xf32> to vector<16x128xf32>
    %40 = arith.addf %39, %12 : vector<16x128xf32>
    %41 = arith.mulf %28, %40 : vector<16x128xf32>
    %42 = arith.extf %38 : vector<16x128xbf16> to vector<16x128xf32>
    %43 = arith.addf %42, %41 : vector<16x128xf32>
    %44 = math.tanh %43 : vector<16x128xf32>
    %cst_17 = arith.constant 1.000000e+00 : f32
    %45 = vector.broadcast %cst_17 : f32 to vector<16x128xf32>
    %46 = arith.subf %45, %37 : vector<16x128xf32>
    %47 = arith.mulf %46, %44 : vector<16x128xf32>
    %48 = arith.mulf %37, %13 : vector<16x128xf32>
    %49 = arith.addf %47, %48 : vector<16x128xf32>
    %c1_i32 = arith.constant 1 : i32
    %c16_i32_18 = arith.constant 16 : i32
    %50 = arith.muli %c1_i32, %c16_i32_18 : i32
    %51 = tpu.assume_multiple %50, 16 : i32
    %52 = arith.index_cast %51 : i32 to index
    %c0_19 = arith.constant 0 : index
    %53 = vector.load %arg15[%52, %c0_19] : memref<128x384xbf16, #tpu.memory_space<vmem>>, vector<16x384xbf16>
    %54 = arith.truncf %49 : vector<16x128xf32> to vector<16x128xbf16>
    %cst_20 = arith.constant dense<0.000000e+00> : vector<16x384xf32>
    %55 = tpu.matmul %54, %9, %cst_20 {dimension_numbers = #tpu.dot_dimension_numbers<[1], [0], [0], [1], [0, 0, 1, 1], [], []>} : vector<16x128xbf16>, vector<128x384xbf16>, vector<16x384xf32> -> vector<16x384xf32>
    %56 = vector.extract_strided_slice %53 {offsets = [0, 0], sizes = [16, 128], strides = [1, 1]} : vector<16x384xbf16> to vector<16x128xbf16>
    %57 = vector.extract_strided_slice %55 {offsets = [0, 0], sizes = [16, 128], strides = [1, 1]} : vector<16x384xf32> to vector<16x128xf32>
    %58 = arith.extf %56 : vector<16x128xbf16> to vector<16x128xf32>
    %59 = arith.addf %58, %57 : vector<16x128xf32>
    %60 = arith.negf %59 : vector<16x128xf32>
    %61 = math.exp %60 : vector<16x128xf32>
    %cst_21 = arith.constant 1.000000e+00 : f32
    %62 = vector.broadcast %cst_21 : f32 to vector<16x128xf32>
    %63 = arith.addf %62, %61 : vector<16x128xf32>
    %64 = arith.divf %62, %63 : vector<16x128xf32>
    %65 = vector.extract_strided_slice %53 {offsets = [0, 128], sizes = [16, 128], strides = [1, 1]} : vector<16x384xbf16> to vector<16x128xbf16>
    %66 = vector.extract_strided_slice %55 {offsets = [0, 128], sizes = [16, 128], strides = [1, 1]} : vector<16x384xf32> to vector<16x128xf32>
    %67 = arith.extf %65 : vector<16x128xbf16> to vector<16x128xf32>
    %68 = arith.addf %67, %66 : vector<16x128xf32>
    %69 = arith.negf %68 : vector<16x128xf32>
    %70 = math.exp %69 : vector<16x128xf32>
    %cst_22 = arith.constant 1.000000e+00 : f32
    %71 = vector.broadcast %cst_22 : f32 to vector<16x128xf32>
    %72 = arith.addf %71, %70 : vector<16x128xf32>
    %73 = arith.divf %71, %72 : vector<16x128xf32>
    %74 = vector.extract_strided_slice %53 {offsets = [0, 256], sizes = [16, 128], strides = [1, 1]} : vector<16x384xbf16> to vector<16x128xbf16>
    %75 = vector.extract_strided_slice %55 {offsets = [0, 256], sizes = [16, 128], strides = [1, 1]} : vector<16x384xf32> to vector<16x128xf32>
    %76 = arith.addf %75, %12 : vector<16x128xf32>
    %77 = arith.mulf %64, %76 : vector<16x128xf32>
    %78 = arith.extf %74 : vector<16x128xbf16> to vector<16x128xf32>
    %79 = arith.addf %78, %77 : vector<16x128xf32>
    %80 = math.tanh %79 : vector<16x128xf32>
    %cst_23 = arith.constant 1.000000e+00 : f32
    %81 = vector.broadcast %cst_23 : f32 to vector<16x128xf32>
    %82 = arith.subf %81, %73 : vector<16x128xf32>
    %83 = arith.mulf %82, %80 : vector<16x128xf32>
    %84 = arith.mulf %73, %49 : vector<16x128xf32>
    %85 = arith.addf %83, %84 : vector<16x128xf32>
    %c2_i32 = arith.constant 2 : i32
    %c16_i32_24 = arith.constant 16 : i32
    %86 = arith.muli %c2_i32, %c16_i32_24 : i32
    %87 = tpu.assume_multiple %86, 16 : i32
    %88 = arith.index_cast %87 : i32 to index
    %c0_25 = arith.constant 0 : index
    %89 = vector.load %arg15[%88, %c0_25] : memref<128x384xbf16, #tpu.memory_space<vmem>>, vector<16x384xbf16>
    %90 = arith.truncf %85 : vector<16x128xf32> to vector<16x128xbf16>
    %cst_26 = arith.constant dense<0.000000e+00> : vector<16x384xf32>
    %91 = tpu.matmul %90, %9, %cst_26 {dimension_numbers = #tpu.dot_dimension_numbers<[1], [0], [0], [1], [0, 0, 1, 1], [], []>} : vector<16x128xbf16>, vector<128x384xbf16>, vector<16x384xf32> -> vector<16x384xf32>
    %92 = vector.extract_strided_slice %89 {offsets = [0, 0], sizes = [16, 128], strides = [1, 1]} : vector<16x384xbf16> to vector<16x128xbf16>
    %93 = vector.extract_strided_slice %91 {offsets = [0, 0], sizes = [16, 128], strides = [1, 1]} : vector<16x384xf32> to vector<16x128xf32>
    %94 = arith.extf %92 : vector<16x128xbf16> to vector<16x128xf32>
    %95 = arith.addf %94, %93 : vector<16x128xf32>
    %96 = arith.negf %95 : vector<16x128xf32>
    %97 = math.exp %96 : vector<16x128xf32>
    %cst_27 = arith.constant 1.000000e+00 : f32
    %98 = vector.broadcast %cst_27 : f32 to vector<16x128xf32>
    %99 = arith.addf %98, %97 : vector<16x128xf32>
    %100 = arith.divf %98, %99 : vector<16x128xf32>
    %101 = vector.extract_strided_slice %89 {offsets = [0, 128], sizes = [16, 128], strides = [1, 1]} : vector<16x384xbf16> to vector<16x128xbf16>
    %102 = vector.extract_strided_slice %91 {offsets = [0, 128], sizes = [16, 128], strides = [1, 1]} : vector<16x384xf32> to vector<16x128xf32>
    %103 = arith.extf %101 : vector<16x128xbf16> to vector<16x128xf32>
    %104 = arith.addf %103, %102 : vector<16x128xf32>
    %105 = arith.negf %104 : vector<16x128xf32>
    %106 = math.exp %105 : vector<16x128xf32>
    %cst_28 = arith.constant 1.000000e+00 : f32
    %107 = vector.broadcast %cst_28 : f32 to vector<16x128xf32>
    %108 = arith.addf %107, %106 : vector<16x128xf32>
    %109 = arith.divf %107, %108 : vector<16x128xf32>
    %110 = vector.extract_strided_slice %89 {offsets = [0, 256], sizes = [16, 128], strides = [1, 1]} : vector<16x384xbf16> to vector<16x128xbf16>
    %111 = vector.extract_strided_slice %91 {offsets = [0, 256], sizes = [16, 128], strides = [1, 1]} : vector<16x384xf32> to vector<16x128xf32>
    %112 = arith.addf %111, %12 : vector<16x128xf32>
    %113 = arith.mulf %100, %112 : vector<16x128xf32>
    %114 = arith.extf %110 : vector<16x128xbf16> to vector<16x128xf32>
    %115 = arith.addf %114, %113 : vector<16x128xf32>
    %116 = math.tanh %115 : vector<16x128xf32>
    %cst_29 = arith.constant 1.000000e+00 : f32
    %117 = vector.broadcast %cst_29 : f32 to vector<16x128xf32>
    %118 = arith.subf %117, %109 : vector<16x128xf32>
    %119 = arith.mulf %118, %116 : vector<16x128xf32>
    %120 = arith.mulf %109, %85 : vector<16x128xf32>
    %121 = arith.addf %119, %120 : vector<16x128xf32>
    %c3_i32 = arith.constant 3 : i32
    %c16_i32_30 = arith.constant 16 : i32
    %122 = arith.muli %c3_i32, %c16_i32_30 : i32
    %123 = tpu.assume_multiple %122, 16 : i32
    %124 = arith.index_cast %123 : i32 to index
    %c0_31 = arith.constant 0 : index
    %125 = vector.load %arg15[%124, %c0_31] : memref<128x384xbf16, #tpu.memory_space<vmem>>, vector<16x384xbf16>
    %126 = arith.truncf %121 : vector<16x128xf32> to vector<16x128xbf16>
    %cst_32 = arith.constant dense<0.000000e+00> : vector<16x384xf32>
    %127 = tpu.matmul %126, %9, %cst_32 {dimension_numbers = #tpu.dot_dimension_numbers<[1], [0], [0], [1], [0, 0, 1, 1], [], []>} : vector<16x128xbf16>, vector<128x384xbf16>, vector<16x384xf32> -> vector<16x384xf32>
    %128 = vector.extract_strided_slice %125 {offsets = [0, 0], sizes = [16, 128], strides = [1, 1]} : vector<16x384xbf16> to vector<16x128xbf16>
    %129 = vector.extract_strided_slice %127 {offsets = [0, 0], sizes = [16, 128], strides = [1, 1]} : vector<16x384xf32> to vector<16x128xf32>
    %130 = arith.extf %128 : vector<16x128xbf16> to vector<16x128xf32>
    %131 = arith.addf %130, %129 : vector<16x128xf32>
    %132 = arith.negf %131 : vector<16x128xf32>
    %133 = math.exp %132 : vector<16x128xf32>
    %cst_33 = arith.constant 1.000000e+00 : f32
    %134 = vector.broadcast %cst_33 : f32 to vector<16x128xf32>
    %135 = arith.addf %134, %133 : vector<16x128xf32>
    %136 = arith.divf %134, %135 : vector<16x128xf32>
    %137 = vector.extract_strided_slice %125 {offsets = [0, 128], sizes = [16, 128], strides = [1, 1]} : vector<16x384xbf16> to vector<16x128xbf16>
    %138 = vector.extract_strided_slice %127 {offsets = [0, 128], sizes = [16, 128], strides = [1, 1]} : vector<16x384xf32> to vector<16x128xf32>
    %139 = arith.extf %137 : vector<16x128xbf16> to vector<16x128xf32>
    %140 = arith.addf %139, %138 : vector<16x128xf32>
    %141 = arith.negf %140 : vector<16x128xf32>
    %142 = math.exp %141 : vector<16x128xf32>
    %cst_34 = arith.constant 1.000000e+00 : f32
    %143 = vector.broadcast %cst_34 : f32 to vector<16x128xf32>
    %144 = arith.addf %143, %142 : vector<16x128xf32>
    %145 = arith.divf %143, %144 : vector<16x128xf32>
    %146 = vector.extract_strided_slice %125 {offsets = [0, 256], sizes = [16, 128], strides = [1, 1]} : vector<16x384xbf16> to vector<16x128xbf16>
    %147 = vector.extract_strided_slice %127 {offsets = [0, 256], sizes = [16, 128], strides = [1, 1]} : vector<16x384xf32> to vector<16x128xf32>
    %148 = arith.addf %147, %12 : vector<16x128xf32>
    %149 = arith.mulf %136, %148 : vector<16x128xf32>
    %150 = arith.extf %146 : vector<16x128xbf16> to vector<16x128xf32>
    %151 = arith.addf %150, %149 : vector<16x128xf32>
    %152 = math.tanh %151 : vector<16x128xf32>
    %cst_35 = arith.constant 1.000000e+00 : f32
    %153 = vector.broadcast %cst_35 : f32 to vector<16x128xf32>
    %154 = arith.subf %153, %145 : vector<16x128xf32>
    %155 = arith.mulf %154, %152 : vector<16x128xf32>
    %156 = arith.mulf %145, %121 : vector<16x128xf32>
    %157 = arith.addf %155, %156 : vector<16x128xf32>
    %c4_i32 = arith.constant 4 : i32
    %c16_i32_36 = arith.constant 16 : i32
    %158 = arith.muli %c4_i32, %c16_i32_36 : i32
    %159 = tpu.assume_multiple %158, 16 : i32
    %160 = arith.index_cast %159 : i32 to index
    %c0_37 = arith.constant 0 : index
    %161 = vector.load %arg15[%160, %c0_37] : memref<128x384xbf16, #tpu.memory_space<vmem>>, vector<16x384xbf16>
    %162 = arith.truncf %157 : vector<16x128xf32> to vector<16x128xbf16>
    %cst_38 = arith.constant dense<0.000000e+00> : vector<16x384xf32>
    %163 = tpu.matmul %162, %9, %cst_38 {dimension_numbers = #tpu.dot_dimension_numbers<[1], [0], [0], [1], [0, 0, 1, 1], [], []>} : vector<16x128xbf16>, vector<128x384xbf16>, vector<16x384xf32> -> vector<16x384xf32>
    %164 = vector.extract_strided_slice %161 {offsets = [0, 0], sizes = [16, 128], strides = [1, 1]} : vector<16x384xbf16> to vector<16x128xbf16>
    %165 = vector.extract_strided_slice %163 {offsets = [0, 0], sizes = [16, 128], strides = [1, 1]} : vector<16x384xf32> to vector<16x128xf32>
    %166 = arith.extf %164 : vector<16x128xbf16> to vector<16x128xf32>
    %167 = arith.addf %166, %165 : vector<16x128xf32>
    %168 = arith.negf %167 : vector<16x128xf32>
    %169 = math.exp %168 : vector<16x128xf32>
    %cst_39 = arith.constant 1.000000e+00 : f32
    %170 = vector.broadcast %cst_39 : f32 to vector<16x128xf32>
    %171 = arith.addf %170, %169 : vector<16x128xf32>
    %172 = arith.divf %170, %171 : vector<16x128xf32>
    %173 = vector.extract_strided_slice %161 {offsets = [0, 128], sizes = [16, 128], strides = [1, 1]} : vector<16x384xbf16> to vector<16x128xbf16>
    %174 = vector.extract_strided_slice %163 {offsets = [0, 128], sizes = [16, 128], strides = [1, 1]} : vector<16x384xf32> to vector<16x128xf32>
    %175 = arith.extf %173 : vector<16x128xbf16> to vector<16x128xf32>
    %176 = arith.addf %175, %174 : vector<16x128xf32>
    %177 = arith.negf %176 : vector<16x128xf32>
    %178 = math.exp %177 : vector<16x128xf32>
    %cst_40 = arith.constant 1.000000e+00 : f32
    %179 = vector.broadcast %cst_40 : f32 to vector<16x128xf32>
    %180 = arith.addf %179, %178 : vector<16x128xf32>
    %181 = arith.divf %179, %180 : vector<16x128xf32>
    %182 = vector.extract_strided_slice %161 {offsets = [0, 256], sizes = [16, 128], strides = [1, 1]} : vector<16x384xbf16> to vector<16x128xbf16>
    %183 = vector.extract_strided_slice %163 {offsets = [0, 256], sizes = [16, 128], strides = [1, 1]} : vector<16x384xf32> to vector<16x128xf32>
    %184 = arith.addf %183, %12 : vector<16x128xf32>
    %185 = arith.mulf %172, %184 : vector<16x128xf32>
    %186 = arith.extf %182 : vector<16x128xbf16> to vector<16x128xf32>
    %187 = arith.addf %186, %185 : vector<16x128xf32>
    %188 = math.tanh %187 : vector<16x128xf32>
    %cst_41 = arith.constant 1.000000e+00 : f32
    %189 = vector.broadcast %cst_41 : f32 to vector<16x128xf32>
    %190 = arith.subf %189, %181 : vector<16x128xf32>
    %191 = arith.mulf %190, %188 : vector<16x128xf32>
    %192 = arith.mulf %181, %157 : vector<16x128xf32>
    %193 = arith.addf %191, %192 : vector<16x128xf32>
    %c5_i32 = arith.constant 5 : i32
    %c16_i32_42 = arith.constant 16 : i32
    %194 = arith.muli %c5_i32, %c16_i32_42 : i32
    %195 = tpu.assume_multiple %194, 16 : i32
    %196 = arith.index_cast %195 : i32 to index
    %c0_43 = arith.constant 0 : index
    %197 = vector.load %arg15[%196, %c0_43] : memref<128x384xbf16, #tpu.memory_space<vmem>>, vector<16x384xbf16>
    %198 = arith.truncf %193 : vector<16x128xf32> to vector<16x128xbf16>
    %cst_44 = arith.constant dense<0.000000e+00> : vector<16x384xf32>
    %199 = tpu.matmul %198, %9, %cst_44 {dimension_numbers = #tpu.dot_dimension_numbers<[1], [0], [0], [1], [0, 0, 1, 1], [], []>} : vector<16x128xbf16>, vector<128x384xbf16>, vector<16x384xf32> -> vector<16x384xf32>
    %200 = vector.extract_strided_slice %197 {offsets = [0, 0], sizes = [16, 128], strides = [1, 1]} : vector<16x384xbf16> to vector<16x128xbf16>
    %201 = vector.extract_strided_slice %199 {offsets = [0, 0], sizes = [16, 128], strides = [1, 1]} : vector<16x384xf32> to vector<16x128xf32>
    %202 = arith.extf %200 : vector<16x128xbf16> to vector<16x128xf32>
    %203 = arith.addf %202, %201 : vector<16x128xf32>
    %204 = arith.negf %203 : vector<16x128xf32>
    %205 = math.exp %204 : vector<16x128xf32>
    %cst_45 = arith.constant 1.000000e+00 : f32
    %206 = vector.broadcast %cst_45 : f32 to vector<16x128xf32>
    %207 = arith.addf %206, %205 : vector<16x128xf32>
    %208 = arith.divf %206, %207 : vector<16x128xf32>
    %209 = vector.extract_strided_slice %197 {offsets = [0, 128], sizes = [16, 128], strides = [1, 1]} : vector<16x384xbf16> to vector<16x128xbf16>
    %210 = vector.extract_strided_slice %199 {offsets = [0, 128], sizes = [16, 128], strides = [1, 1]} : vector<16x384xf32> to vector<16x128xf32>
    %211 = arith.extf %209 : vector<16x128xbf16> to vector<16x128xf32>
    %212 = arith.addf %211, %210 : vector<16x128xf32>
    %213 = arith.negf %212 : vector<16x128xf32>
    %214 = math.exp %213 : vector<16x128xf32>
    %cst_46 = arith.constant 1.000000e+00 : f32
    %215 = vector.broadcast %cst_46 : f32 to vector<16x128xf32>
    %216 = arith.addf %215, %214 : vector<16x128xf32>
    %217 = arith.divf %215, %216 : vector<16x128xf32>
    %218 = vector.extract_strided_slice %197 {offsets = [0, 256], sizes = [16, 128], strides = [1, 1]} : vector<16x384xbf16> to vector<16x128xbf16>
    %219 = vector.extract_strided_slice %199 {offsets = [0, 256], sizes = [16, 128], strides = [1, 1]} : vector<16x384xf32> to vector<16x128xf32>
    %220 = arith.addf %219, %12 : vector<16x128xf32>
    %221 = arith.mulf %208, %220 : vector<16x128xf32>
    %222 = arith.extf %218 : vector<16x128xbf16> to vector<16x128xf32>
    %223 = arith.addf %222, %221 : vector<16x128xf32>
    %224 = math.tanh %223 : vector<16x128xf32>
    %cst_47 = arith.constant 1.000000e+00 : f32
    %225 = vector.broadcast %cst_47 : f32 to vector<16x128xf32>
    %226 = arith.subf %225, %217 : vector<16x128xf32>
    %227 = arith.mulf %226, %224 : vector<16x128xf32>
    %228 = arith.mulf %217, %193 : vector<16x128xf32>
    %229 = arith.addf %227, %228 : vector<16x128xf32>
    %c6_i32 = arith.constant 6 : i32
    %c16_i32_48 = arith.constant 16 : i32
    %230 = arith.muli %c6_i32, %c16_i32_48 : i32
    %231 = tpu.assume_multiple %230, 16 : i32
    %232 = arith.index_cast %231 : i32 to index
    %c0_49 = arith.constant 0 : index
    %233 = vector.load %arg15[%232, %c0_49] : memref<128x384xbf16, #tpu.memory_space<vmem>>, vector<16x384xbf16>
    %234 = arith.truncf %229 : vector<16x128xf32> to vector<16x128xbf16>
    %cst_50 = arith.constant dense<0.000000e+00> : vector<16x384xf32>
    %235 = tpu.matmul %234, %9, %cst_50 {dimension_numbers = #tpu.dot_dimension_numbers<[1], [0], [0], [1], [0, 0, 1, 1], [], []>} : vector<16x128xbf16>, vector<128x384xbf16>, vector<16x384xf32> -> vector<16x384xf32>
    %236 = vector.extract_strided_slice %233 {offsets = [0, 0], sizes = [16, 128], strides = [1, 1]} : vector<16x384xbf16> to vector<16x128xbf16>
    %237 = vector.extract_strided_slice %235 {offsets = [0, 0], sizes = [16, 128], strides = [1, 1]} : vector<16x384xf32> to vector<16x128xf32>
    %238 = arith.extf %236 : vector<16x128xbf16> to vector<16x128xf32>
    %239 = arith.addf %238, %237 : vector<16x128xf32>
    %240 = arith.negf %239 : vector<16x128xf32>
    %241 = math.exp %240 : vector<16x128xf32>
    %cst_51 = arith.constant 1.000000e+00 : f32
    %242 = vector.broadcast %cst_51 : f32 to vector<16x128xf32>
    %243 = arith.addf %242, %241 : vector<16x128xf32>
    %244 = arith.divf %242, %243 : vector<16x128xf32>
    %245 = vector.extract_strided_slice %233 {offsets = [0, 128], sizes = [16, 128], strides = [1, 1]} : vector<16x384xbf16> to vector<16x128xbf16>
    %246 = vector.extract_strided_slice %235 {offsets = [0, 128], sizes = [16, 128], strides = [1, 1]} : vector<16x384xf32> to vector<16x128xf32>
    %247 = arith.extf %245 : vector<16x128xbf16> to vector<16x128xf32>
    %248 = arith.addf %247, %246 : vector<16x128xf32>
    %249 = arith.negf %248 : vector<16x128xf32>
    %250 = math.exp %249 : vector<16x128xf32>
    %cst_52 = arith.constant 1.000000e+00 : f32
    %251 = vector.broadcast %cst_52 : f32 to vector<16x128xf32>
    %252 = arith.addf %251, %250 : vector<16x128xf32>
    %253 = arith.divf %251, %252 : vector<16x128xf32>
    %254 = vector.extract_strided_slice %233 {offsets = [0, 256], sizes = [16, 128], strides = [1, 1]} : vector<16x384xbf16> to vector<16x128xbf16>
    %255 = vector.extract_strided_slice %235 {offsets = [0, 256], sizes = [16, 128], strides = [1, 1]} : vector<16x384xf32> to vector<16x128xf32>
    %256 = arith.addf %255, %12 : vector<16x128xf32>
    %257 = arith.mulf %244, %256 : vector<16x128xf32>
    %258 = arith.extf %254 : vector<16x128xbf16> to vector<16x128xf32>
    %259 = arith.addf %258, %257 : vector<16x128xf32>
    %260 = math.tanh %259 : vector<16x128xf32>
    %cst_53 = arith.constant 1.000000e+00 : f32
    %261 = vector.broadcast %cst_53 : f32 to vector<16x128xf32>
    %262 = arith.subf %261, %253 : vector<16x128xf32>
    %263 = arith.mulf %262, %260 : vector<16x128xf32>
    %264 = arith.mulf %253, %229 : vector<16x128xf32>
    %265 = arith.addf %263, %264 : vector<16x128xf32>
    %c7_i32 = arith.constant 7 : i32
    %c16_i32_54 = arith.constant 16 : i32
    %266 = arith.muli %c7_i32, %c16_i32_54 : i32
    %267 = tpu.assume_multiple %266, 16 : i32
    %268 = arith.index_cast %267 : i32 to index
    %c0_55 = arith.constant 0 : index
    %269 = vector.load %arg15[%268, %c0_55] : memref<128x384xbf16, #tpu.memory_space<vmem>>, vector<16x384xbf16>
    %270 = arith.truncf %265 : vector<16x128xf32> to vector<16x128xbf16>
    %cst_56 = arith.constant dense<0.000000e+00> : vector<16x384xf32>
    %271 = tpu.matmul %270, %9, %cst_56 {dimension_numbers = #tpu.dot_dimension_numbers<[1], [0], [0], [1], [0, 0, 1, 1], [], []>} : vector<16x128xbf16>, vector<128x384xbf16>, vector<16x384xf32> -> vector<16x384xf32>
    %272 = vector.extract_strided_slice %269 {offsets = [0, 0], sizes = [16, 128], strides = [1, 1]} : vector<16x384xbf16> to vector<16x128xbf16>
    %273 = vector.extract_strided_slice %271 {offsets = [0, 0], sizes = [16, 128], strides = [1, 1]} : vector<16x384xf32> to vector<16x128xf32>
    %274 = arith.extf %272 : vector<16x128xbf16> to vector<16x128xf32>
    %275 = arith.addf %274, %273 : vector<16x128xf32>
    %276 = arith.negf %275 : vector<16x128xf32>
    %277 = math.exp %276 : vector<16x128xf32>
    %cst_57 = arith.constant 1.000000e+00 : f32
    %278 = vector.broadcast %cst_57 : f32 to vector<16x128xf32>
    %279 = arith.addf %278, %277 : vector<16x128xf32>
    %280 = arith.divf %278, %279 : vector<16x128xf32>
    %281 = vector.extract_strided_slice %269 {offsets = [0, 128], sizes = [16, 128], strides = [1, 1]} : vector<16x384xbf16> to vector<16x128xbf16>
    %282 = vector.extract_strided_slice %271 {offsets = [0, 128], sizes = [16, 128], strides = [1, 1]} : vector<16x384xf32> to vector<16x128xf32>
    %283 = arith.extf %281 : vector<16x128xbf16> to vector<16x128xf32>
    %284 = arith.addf %283, %282 : vector<16x128xf32>
    %285 = arith.negf %284 : vector<16x128xf32>
    %286 = math.exp %285 : vector<16x128xf32>
    %cst_58 = arith.constant 1.000000e+00 : f32
    %287 = vector.broadcast %cst_58 : f32 to vector<16x128xf32>
    %288 = arith.addf %287, %286 : vector<16x128xf32>
    %289 = arith.divf %287, %288 : vector<16x128xf32>
    %290 = vector.extract_strided_slice %269 {offsets = [0, 256], sizes = [16, 128], strides = [1, 1]} : vector<16x384xbf16> to vector<16x128xbf16>
    %291 = vector.extract_strided_slice %271 {offsets = [0, 256], sizes = [16, 128], strides = [1, 1]} : vector<16x384xf32> to vector<16x128xf32>
    %292 = arith.addf %291, %12 : vector<16x128xf32>
    %293 = arith.mulf %280, %292 : vector<16x128xf32>
    %294 = arith.extf %290 : vector<16x128xbf16> to vector<16x128xf32>
    %295 = arith.addf %294, %293 : vector<16x128xf32>
    %296 = math.tanh %295 : vector<16x128xf32>
    %cst_59 = arith.constant 1.000000e+00 : f32
    %297 = vector.broadcast %cst_59 : f32 to vector<16x128xf32>
    %298 = arith.subf %297, %289 : vector<16x128xf32>
    %299 = arith.mulf %298, %296 : vector<16x128xf32>
    %300 = arith.mulf %289, %265 : vector<16x128xf32>
    %301 = arith.addf %299, %300 : vector<16x128xf32>
    %c8_i32 = arith.constant 8 : i32
    %c0_60 = arith.constant 0 : index
    %c0_61 = arith.constant 0 : index
    %302 = vector.load %arg2[%c0_60, %c0_61] : memref<16x128xbf16, #tpu.memory_space<vmem>>, vector<16x128xbf16>
    %303 = arith.truncf %301 : vector<16x128xf32> to vector<16x128xbf16>
    %c0_62 = arith.constant 0 : index
    %c0_63 = arith.constant 0 : index
    %304 = vector.load %arg7[%c0_62, %c0_63] : memref<128x256xbf16, #tpu.memory_space<vmem>>, vector<128x256xbf16>
    %cst_64 = arith.constant dense<0.000000e+00> : vector<16x256xf32>
    %305 = tpu.matmul %303, %304, %cst_64 {dimension_numbers = #tpu.dot_dimension_numbers<[1], [0], [0], [1], [0, 0, 1, 1], [], []>} : vector<16x128xbf16>, vector<128x256xbf16>, vector<16x256xf32> -> vector<16x256xf32>
    %c0_65 = arith.constant 0 : index
    %c0_66 = arith.constant 0 : index
    %306 = vector.load %arg8[%c0_65, %c0_66] : memref<1x256xf32, #tpu.memory_space<vmem>>, vector<1x256xf32>
    %307 = vector.broadcast %306 : vector<1x256xf32> to vector<16x256xf32>
    %308 = arith.addf %305, %307 : vector<16x256xf32>
    %309 = vector.extract_strided_slice %308 {offsets = [0, 0], sizes = [16, 128], strides = [1, 1]} : vector<16x256xf32> to vector<16x128xf32>
    %310 = math.tanh %309 : vector<16x128xf32>
    %311 = vector.extract_strided_slice %308 {offsets = [0, 128], sizes = [16, 128], strides = [1, 1]} : vector<16x256xf32> to vector<16x128xf32>
    %312 = arith.negf %311 : vector<16x128xf32>
    %313 = math.exp %312 : vector<16x128xf32>
    %cst_67 = arith.constant 1.000000e+00 : f32
    %314 = vector.broadcast %cst_67 : f32 to vector<16x128xf32>
    %315 = arith.addf %314, %313 : vector<16x128xf32>
    %316 = arith.divf %314, %315 : vector<16x128xf32>
    %317 = arith.mulf %310, %316 : vector<16x128xf32>
    %c0_68 = arith.constant 0 : index
    %c0_69 = arith.constant 0 : index
    %318 = vector.load %arg9[%c0_68, %c0_69] : memref<128x256xbf16, #tpu.memory_space<vmem>>, vector<128x256xbf16>
    %cst_70 = arith.constant dense<0.000000e+00> : vector<16x256xf32>
    %319 = tpu.matmul %302, %318, %cst_70 {dimension_numbers = #tpu.dot_dimension_numbers<[1], [0], [0], [1], [0, 0, 1, 1], [], []>} : vector<16x128xbf16>, vector<128x256xbf16>, vector<16x256xf32> -> vector<16x256xf32>
    %c0_71 = arith.constant 0 : index
    %c0_72 = arith.constant 0 : index
    %320 = vector.load %arg10[%c0_71, %c0_72] : memref<1x256xf32, #tpu.memory_space<vmem>>, vector<1x256xf32>
    %321 = vector.broadcast %320 : vector<1x256xf32> to vector<16x256xf32>
    %322 = arith.addf %319, %321 : vector<16x256xf32>
    %323 = vector.extract_strided_slice %322 {offsets = [0, 0], sizes = [16, 128], strides = [1, 1]} : vector<16x256xf32> to vector<16x128xf32>
    %324 = math.tanh %323 : vector<16x128xf32>
    %325 = vector.extract_strided_slice %322 {offsets = [0, 128], sizes = [16, 128], strides = [1, 1]} : vector<16x256xf32> to vector<16x128xf32>
    %326 = arith.negf %325 : vector<16x128xf32>
    %327 = math.exp %326 : vector<16x128xf32>
    %cst_73 = arith.constant 1.000000e+00 : f32
    %328 = vector.broadcast %cst_73 : f32 to vector<16x128xf32>
    %329 = arith.addf %328, %327 : vector<16x128xf32>
    %330 = arith.divf %328, %329 : vector<16x128xf32>
    %331 = arith.mulf %324, %330 : vector<16x128xf32>
    %332 = arith.mulf %317, %331 : vector<16x128xf32>
    %333 = arith.truncf %332 : vector<16x128xf32> to vector<16x128xbf16>
    %c0_74 = arith.constant 0 : index
    %c0_75 = arith.constant 0 : index
    %334 = vector.load %arg11[%c0_74, %c0_75] : memref<128x256xbf16, #tpu.memory_space<vmem>>, vector<128x256xbf16>
    %cst_76 = arith.constant dense<0.000000e+00> : vector<16x256xf32>
    %335 = tpu.matmul %333, %334, %cst_76 {dimension_numbers = #tpu.dot_dimension_numbers<[1], [0], [0], [1], [0, 0, 1, 1], [], []>} : vector<16x128xbf16>, vector<128x256xbf16>, vector<16x256xf32> -> vector<16x256xf32>
    %c0_77 = arith.constant 0 : index
    %c0_78 = arith.constant 0 : index
    %336 = vector.load %arg12[%c0_77, %c0_78] : memref<1x256xf32, #tpu.memory_space<vmem>>, vector<1x256xf32>
    %337 = vector.broadcast %336 : vector<1x256xf32> to vector<16x256xf32>
    %338 = arith.addf %335, %337 : vector<16x256xf32>
    %339 = vector.extract_strided_slice %338 {offsets = [0, 0], sizes = [16, 128], strides = [1, 1]} : vector<16x256xf32> to vector<16x128xf32>
    %340 = math.tanh %339 : vector<16x128xf32>
    %341 = vector.extract_strided_slice %338 {offsets = [0, 128], sizes = [16, 128], strides = [1, 1]} : vector<16x256xf32> to vector<16x128xf32>
    %342 = arith.negf %341 : vector<16x128xf32>
    %343 = math.exp %342 : vector<16x128xf32>
    %cst_79 = arith.constant 1.000000e+00 : f32
    %344 = vector.broadcast %cst_79 : f32 to vector<16x128xf32>
    %345 = arith.addf %344, %343 : vector<16x128xf32>
    %346 = arith.divf %344, %345 : vector<16x128xf32>
    %347 = arith.mulf %340, %346 : vector<16x128xf32>
    %348 = arith.truncf %347 : vector<16x128xf32> to vector<16x128xbf16>
    %c0_80 = arith.constant 0 : index
    %c0_81 = arith.constant 0 : index
    %349 = vector.load %arg13[%c0_80, %c0_81] : memref<128x256xbf16, #tpu.memory_space<vmem>>, vector<128x256xbf16>
    %cst_82 = arith.constant dense<0.000000e+00> : vector<16x256xf32>
    %350 = tpu.matmul %348, %349, %cst_82 {dimension_numbers = #tpu.dot_dimension_numbers<[1], [0], [0], [1], [0, 0, 1, 1], [], []>} : vector<16x128xbf16>, vector<128x256xbf16>, vector<16x256xf32> -> vector<16x256xf32>
    %351 = arith.negf %350 : vector<16x256xf32>
    %352 = math.exp %351 : vector<16x256xf32>
    %cst_83 = arith.constant 1.000000e+00 : f32
    %353 = vector.broadcast %cst_83 : f32 to vector<16x256xf32>
    %354 = arith.addf %353, %352 : vector<16x256xf32>
    %355 = arith.divf %353, %354 : vector<16x256xf32>
    %c0_84 = arith.constant 0 : index
    %c0_85 = arith.constant 0 : index
    %356 = vector.load %arg14[%c0_84, %c0_85] : memref<16x256xf32, #tpu.memory_space<vmem>>, vector<16x256xf32>
    tpu.vector_store %arg14[%c0_84, %c0_85], %355 {strides = array<i32>} : memref<16x256xf32, #tpu.memory_space<vmem>>, vector<16x256xf32>,
    return
  }
  func.func @transform_0(%arg0: i32) -> (i32, i32, i32) {
    %c0_i32 = arith.constant 0 : i32
    %c0_i32_0 = arith.constant 0 : i32
    %c0_i32_1 = arith.constant 0 : i32
    return %arg0, %c0_i32, %c0_i32_0 : i32, i32, i32
  }
  func.func @transform_1(%arg0: i32) -> (i32, i32) {
    %c0_i32 = arith.constant 0 : i32
    %c0_i32_0 = arith.constant 0 : i32
    return %arg0, %c0_i32 : i32, i32
  }
  func.func @transform_2(%arg0: i32) -> (i32, i32) {
    %c0_i32 = arith.constant 0 : i32
    %c0_i32_0 = arith.constant 0 : i32
    %c0_i32_1 = arith.constant 0 : i32
    return %c0_i32, %c0_i32_0 : i32, i32
  }
  func.func @transform_3(%arg0: i32) -> (i32, i32) {
    %c0_i32 = arith.constant 0 : i32
    %c0_i32_0 = arith.constant 0 : i32
    %c0_i32_1 = arith.constant 0 : i32
    return %c0_i32, %c0_i32_0 : i32, i32
  }
  func.func @transform_4(%arg0: i32) -> (i32, i32) {
    %c0_i32 = arith.constant 0 : i32
    %c0_i32_0 = arith.constant 0 : i32
    %c0_i32_1 = arith.constant 0 : i32
    return %c0_i32, %c0_i32_0 : i32, i32
  }
  func.func @transform_5(%arg0: i32) -> (i32, i32) {
    %c0_i32 = arith.constant 0 : i32
    %c0_i32_0 = arith.constant 0 : i32
    %c0_i32_1 = arith.constant 0 : i32
    return %c0_i32, %c0_i32_0 : i32, i32
  }
  func.func @transform_6(%arg0: i32) -> (i32, i32) {
    %c0_i32 = arith.constant 0 : i32
    %c0_i32_0 = arith.constant 0 : i32
    %c0_i32_1 = arith.constant 0 : i32
    return %c0_i32, %c0_i32_0 : i32, i32
  }
  func.func @transform_7(%arg0: i32) -> (i32, i32) {
    %c0_i32 = arith.constant 0 : i32
    %c0_i32_0 = arith.constant 0 : i32
    %c0_i32_1 = arith.constant 0 : i32
    return %c0_i32, %c0_i32_0 : i32, i32
  }
  func.func @transform_8(%arg0: i32) -> (i32, i32) {
    %c0_i32 = arith.constant 0 : i32
    %c0_i32_0 = arith.constant 0 : i32
    %c0_i32_1 = arith.constant 0 : i32
    return %c0_i32, %c0_i32_0 : i32, i32
  }
  func.func @transform_9(%arg0: i32) -> (i32, i32) {
    %c0_i32 = arith.constant 0 : i32
    %c0_i32_0 = arith.constant 0 : i32
    %c0_i32_1 = arith.constant 0 : i32
    return %c0_i32, %c0_i32_0 : i32, i32
  }
  func.func @transform_10(%arg0: i32) -> (i32, i32) {
    %c0_i32 = arith.constant 0 : i32
    %c0_i32_0 = arith.constant 0 : i32
    %c0_i32_1 = arith.constant 0 : i32
    return %c0_i32, %c0_i32_0 : i32, i32
  }
  func.func @transform_11(%arg0: i32) -> (i32, i32) {
    %c0_i32 = arith.constant 0 : i32
    %c0_i32_0 = arith.constant 0 : i32
    %c0_i32_1 = arith.constant 0 : i32
    return %c0_i32, %c0_i32_0 : i32, i32
  }
  func.func @transform_12(%arg0: i32) -> (i32, i32) {
    %c0_i32 = arith.constant 0 : i32
    %c0_i32_0 = arith.constant 0 : i32
    %c0_i32_1 = arith.constant 0 : i32
    return %c0_i32, %c0_i32_0 : i32, i32
  }
  func.func @transform_13(%arg0: i32) -> (i32, i32) {
    %c0_i32 = arith.constant 0 : i32
    %c0_i32_0 = arith.constant 0 : i32
    return %arg0, %c0_i32 : i32, i32
  }
}

</mosaic_0001>

<bundles_post_ra>
// kernel: vqa_forward.1
= control target key start
LH: loop header
LB: loop body
LE: loop exit
PB: predicated region body
PF: predicated region fallthrough
CT: control target
= control target key end

     0   :  { %18 = vsyncpa [#allocation4], 0  ;;  %s5256_s0 = inlined_call_operand.vmem [shape: bf16[2,128,128], index: 0, kind: input, shape index: {}]   ;;  %s5257_s1 = inlined_call_operand.vmem [shape: bf16[32,128], index: 1, kind: input, shape index: {}]   ;;  %s5258_s2 = inlined_call_operand.vmem [shape: bf16[128,384], index: 2, kind: input, shape index: {}]   ;;  %s5259_s3 = inlined_call_operand.vmem [shape: bf16[128,384], index: 3, kind: input, shape index: {}]   ;;  %s5260_s4 = inlined_call_operand.vmem [shape: f32[1,384], index: 4, kind: input, shape index: {}]   ;;  %s5261_s5 = inlined_call_operand.vmem [shape: f32[1,128], index: 5, kind: input, shape index: {}]   ;;  %s5262_s6 = inlined_call_operand.vmem [shape: bf16[128,256], index: 6, kind: input, shape index: {}]   ;;  %s5263_s7 = inlined_call_operand.vmem [shape: f32[1,256], index: 7, kind: input, shape index: {}]   ;;  %s5264_s8 = inlined_call_operand.vmem [shape: bf16[128,256], index: 8, kind: input, shape index: {}]   ;;  %s5265_s9 = inlined_call_operand.vmem [shape: f32[1,256], index: 9, kind: input, shape index: {}]   ;;  %s5266_s10 = inlined_call_operand.vmem [shape: bf16[128,256], index: 10, kind: input, shape index: {}]   ;;  %s5267_s11 = inlined_call_operand.vmem [shape: f32[1,256], index: 11, kind: input, shape index: {}]   ;;  %s5268_s12 = inlined_call_operand.vmem [shape: bf16[128,256], index: 12, kind: input, shape index: {}]   ;;  %s5269_s13 = inlined_call_operand.hbm [shape: f32[32,256], index: 13, kind: output, shape index: {}]  }
   0x1   :  { %20 = vsyncpa [#allocation4 + $0x1], 0  ;;  %s4085_s25 = smov 0   ;;  %s4087_s26 = smov 0  }
   0x2   :  { %s4089_s27 = smov 0   ;;  %s4091_s28 = smov 0  }
   0x3 LB: > { %5287 = sst [smem:[#allocation6_spill]] %s4003_s27  ;;  %s4106_s29 = sadd.s32 4294967295, %s4007_s28   ;;  %s4007_s28 = sphi %s4091_s28, %s5310_s28   ;;  %s4003_s27 = sphi %s4089_s27, %s5312_s27   ;;  %s3999_s26 = sphi %s4087_s26, %s5314_s26   ;;  %s3995_s25 = sphi %s4085_s25, %s5313_s25  }
   0x4   : > { %s3033_s30 = sadd.s32 4294967294, %s4007_s28   ;;  %s4110_s14 = sadd.s32 1, %s4007_s28  }
   0x5   : > { %5288 = sst [smem:[#allocation7_spill]] %s4110_s14  ;;  %s316_s15 = sadd.s32 1, %s4003_s27 }
   0x6   : > { %s313_s16 = ssub.s32 %s4007_s28, %s4110_s14  ;;  %p326_p0 = scmp.ne.s32.totalorder %s4003_s27, %s3999_s26 }
   0x7   : > { %p314_p1 = scmp.eq.s32.totalorder %s313_s16, 0  ;;  %p327_p2 = scmp.eq.s32.totalorder %s4106_s29, 1 }
   0x8   : > { %p332_p3 = scmp.ne.s32.totalorder %s3999_s26, %s3995_s25  ;;  %p333_p4 = scmp.eq.s32.totalorder %s3033_s30, 1 }
   0x9   : > { %s4121_s17 = scalar_select %p314_p1, %s4003_s27, %s316_s15  }
   0xa   : > { %p4123_p5 = por %p327_p2, %p326_p0  ;;  %p4127_p6 = por %p333_p4, %p332_p3 }
   0xb   : > { %5289 = sst [smem:[#allocation8_spill]] %s4121_s17  ;;  %p3036_p7 = scmp.ge.s32.totalorder %s4007_s28, 1 }
   0xc   : > { %s5291_s19 = scalar_select %p4127_p6, 1, 0 }
   0xd   : > { %p401_p8 = scmp.lt.s32.totalorder %s4007_s28, 3 }
   0xe   : > { %5292 = sst [smem:[#allocation9_spill]] %s5291_s19 }
   0xf   : > { %p402_p9 = pnand %p3036_p7, %p401_p8 }
  0x11   : > { %405 = sbr.rel (%p402_p9) target bundleno = 2951 (0xb87), region = 72 }
  0x18   : > { %v3539_v0 = vld [vmem:[%s5258_s2 + $0x4] ss:$12 sps:$4 sm:$0xff]   ;;  %v3541_v1 = vld [vmem:[%s5258_s2 + $0x8] ss:$12 sps:$4 sm:$0xff]   ;;  %v5274_v2 = vmov 0   ;;  %p450_p10 = scmp.lt.s32.totalorder %s4106_s29, 1  ;;  %v513_v58 = vlaneseq }
  0x19   : > { %736 = vmatprep.mubr.bf16.mxu0 %v5274_v2  ;;  %704 = vmatprep.subr.bf16.mxu0 %v3539_v0  ;;  %v3542_v3 = vld [vmem:[%s5258_s2] ss:$12 sps:$4 sm:$0xff]   ;;  %v3543_v4 = vld [vmem:[%s5258_s2 + $0x1c] ss:$12 sps:$4 sm:$0xff]   ;;  %v3546_v6 = vld [vmem:[%s5258_s2 + $0x18] ss:$12 sps:$4 sm:$0xff]  }
  0x1a   : > { %3303 = vmatprep.subr.bf16.mxu1 %v3541_v1  ;;  %705 = vmatpush1.bf16.msra.mxu0 %v3542_v3  ;;  %v3545_v5 = vld [vmem:[%s5258_s2 + $0x20] ss:$12 sps:$4 sm:$0xff]   ;;  %v3549_v8 = vld [vmem:[%s5258_s2 + $0x38] ss:$12 sps:$4 sm:$0xff]   ;;  %v3550_v9 = vld [vmem:[%s5258_s2 + $0x30] ss:$12 sps:$4 sm:$0xff]  }
  0x1b   : > { %3304 = vmatpush3.bf16.msra.mxu1 %v3541_v1  ;;  %706 = vmatprep.subr.bf16.mxu0 %v3543_v4  ;;  %v3547_v7 = vld [vmem:[%s5258_s2 + $0x34] ss:$12 sps:$4 sm:$0xff]   ;;  %s451_s20 = scalar_select %p450_p10, %s4106_s29, 1  ;;  %v3551_v10 = vld [vmem:[%s5258_s2 + $0x4c] ss:$12 sps:$4 sm:$0xff]   ;;  %v5276_v30 = vmov 0.0  }
  0x1c   : > { %3305 = vmatprep.subr.bf16.mxu1 %v3545_v5  ;;  %v3553_v11 = vld [vmem:[%s5258_s2 + $0x50] ss:$12 sps:$4 sm:$0xff]   ;;  %v3554_v12 = vld [vmem:[%s5258_s2 + $0x48] ss:$12 sps:$4 sm:$0xff]   ;;  %v3558_v15 = vld [vmem:[%s5258_s2 + $0x60] ss:$12 sps:$4 sm:$0xff]  }
  0x1d   : > { %s3212_s30 = sshll.u32 %s451_s20, 6  ;;  %v3555_v13 = vld [vmem:[%s5258_s2 + $0x64] ss:$12 sps:$4 sm:$0xff]   ;;  %v3557_v14 = vld [vmem:[%s5258_s2 + $0x68] ss:$12 sps:$4 sm:$0xff]   ;;  %vm4011_vm0 = vmmov 0  }
  0x1e   : > { %707 = vmatpush1.bf16.msra.mxu0 %v3546_v6  ;;  %v3559_v16 = vld [vmem:[%s5258_s2 + $0x7c] ss:$12 sps:$4 sm:$0xff]   ;;  %s4187_s19 = scalar_lea.vmem %s5256_s0, %s3212_s30  ;;  %v3561_v17 = vld [vmem:[%s5258_s2 + $0x80] ss:$12 sps:$4 sm:$0xff]   ;;  %v3562_v19 = vld [vmem:[%s5258_s2 + $0x78] ss:$12 sps:$4 sm:$0xff]  }
  0x1f   : > { %3306 = vmatpush3.bf16.msra.mxu1 %v3545_v5  ;;  %708 = vmatprep.subr.bf16.mxu0 %v3547_v7  ;;  %v3571_v18 = vld [vmem:[%s4187_s19] sm:$0xff]   ;;  %v3566_v22 = vld [vmem:[%s5258_s2 + $0x90] ss:$12 sps:$4 sm:$0xff]   ;;  %v3567_v23 = vld [vmem:[%s5258_s2 + $0xac] ss:$12 sps:$4 sm:$0xff]   ;;  %v514_v59 = vshrl.u32 %v513_v58, 7 }
  0x20   : > { %3307 = vmatprep.subr.bf16.mxu1 %v3549_v8  ;;  %v3563_v20 = vld [vmem:[%s5258_s2 + $0x94] ss:$12 sps:$4 sm:$0xff]   ;;  %v3565_v21 = vld [vmem:[%s5258_s2 + $0x98] ss:$12 sps:$4 sm:$0xff]   ;;  %3319 = vmatprep.mubr.bf16.mxu1 %v3571_v18  ;;  %v3569_v24 = vld [vmem:[%s5258_s2 + $0xb0] ss:$12 sps:$4 sm:$0xff]  }
  0x21   : > { %v3570_v25 = vld [vmem:[%s5258_s2 + $0xa8] ss:$12 sps:$4 sm:$0xff]   ;;  %v4217_v26 = vld [vmem:[%s5259_s3 + $0x4] ss:$12 sps:$4 sm:$0xff]   ;;  %v4223_v28 = vld [vmem:[%s5259_s3] ss:$12 sps:$4 sm:$0xff]  }
  0x22   : > { %709 = vmatpush1.bf16.msra.mxu0 %v3550_v9  ;;  %v3572_v27 = vld [vmem:[%s4187_s19 + $0x8] sm:$0xff]   ;;  %v3580_v32 = vld [vmem:[%s4187_s19 + $0x10] sm:$0xff]   ;;  %v4241_v33 = vld [vmem:[%s5259_s3 + $0x18] ss:$12 sps:$4 sm:$0xff]   ;;  %v523_v60 = vsub.s32 2, %v514_v59  ;;  %v4422_v61 = vsub.s32 0, %v514_v59 }
  0x23   : > { %3308 = vmatpush3.bf16.msra.mxu1 %v3549_v8  ;;  %710 = vmatprep.subr.bf16.mxu0 %v3551_v10  ;;  %v4228_v29 = vld [vmem:[%s5259_s3 + $0x8] ss:$12 sps:$4 sm:$0xff]   ;;  %v4248_v34 = vld [vmem:[%s5259_s3 + $0x20] ss:$12 sps:$4 sm:$0xff]   ;;  %v3581_v36 = vld [vmem:[%s4187_s19 + $0x18] sm:$0xff]   ;;  %v4427_v63 = vsub.s32 1, %v514_v59 }
  0x24   : > { %3309 = vmatprep.subr.bf16.mxu1 %v3553_v11  ;;  %v4235_v31 = vld [vmem:[%s5259_s3 + $0x1c] ss:$12 sps:$4 sm:$0xff]   ;;  %v4255_v35 = vld [vmem:[%s5259_s3 + $0x34] ss:$12 sps:$4 sm:$0xff]   ;;  %v4269_v38 = vld [vmem:[%s5259_s3 + $0x4c] ss:$12 sps:$4 sm:$0xff]  }
  0x25   : > { %v4262_v37 = vld [vmem:[%s5259_s3 + $0x30] ss:$12 sps:$4 sm:$0xff]   ;;  %v3589_v39 = vld [vmem:[%s4187_s19 + $0x20] sm:$0xff]   ;;  %v4283_v41 = vld [vmem:[%s5259_s3 + $0x48] ss:$12 sps:$4 sm:$0xff]   ;;  %5293 = vst [vmem:[#allocation10_spill] sm:$0xff] %v4422_v61 }
  0x26   : > { %711 = vmatpush1.bf16.msra.mxu0 %v3554_v12  ;;  %v4277_v40 = vld [vmem:[%s5259_s3 + $0x38] ss:$12 sps:$4 sm:$0xff]   ;;  %v3590_v42 = vld [vmem:[%s4187_s19 + $0x28] sm:$0xff]   ;;  %v4296_v44 = vld [vmem:[%s5259_s3 + $0x50] ss:$12 sps:$4 sm:$0xff]   ;;  %5294 = vst [vmem:[#allocation11_spill] sm:$0xff] %v4427_v63 }
  0x27   : > { %3310 = vmatpush3.bf16.msra.mxu1 %v3553_v11  ;;  %712 = vmatprep.subr.bf16.mxu0 %v3555_v13  ;;  %v4291_v43 = vld [vmem:[%s5259_s3 + $0x64] ss:$12 sps:$4 sm:$0xff]   ;;  %v4301_v45 = vld [vmem:[%s5259_s3 + $0x60] ss:$12 sps:$4 sm:$0xff]   ;;  %v4307_v46 = vld [vmem:[%s5259_s3 + $0x7c] ss:$12 sps:$4 sm:$0xff]  }
  0x28   : > { %3311 = vmatprep.subr.bf16.mxu1 %v3557_v14  ;;  %v3598_v47 = vld [vmem:[%s4187_s19 + $0x30] sm:$0xff]   ;;  %v4321_v49 = vld [vmem:[%s5259_s3 + $0x78] ss:$12 sps:$4 sm:$0xff]   ;;  %v4350_v54 = vld [vmem:[%s5259_s3 + $0x80] ss:$12 sps:$4 sm:$0xff]   ;;  %s3040_s14 = sshll.u32 %s4106_s29, 1 }
  0x29   : > { %v4316_v48 = vld [vmem:[%s5259_s3 + $0x68] ss:$12 sps:$4 sm:$0xff]   ;;  %v3599_v51 = vld [vmem:[%s4187_s19 + $0x38] sm:$0xff]   ;;  %v511_v62 = vld [vmem:[%s5260_s4] sm:$0x7]  ;;  %p456_p11 = scmp.lt.s32.totalorder %s3040_s14, 3 }
  0x2a   : > { %713 = vmatpush1.bf16.msra.mxu0 %v3558_v15  ;;  %v4327_v50 = vld [vmem:[%s5259_s3 + $0x94] ss:$12 sps:$4 sm:$0xff]   ;;  %v4336_v52 = vld [vmem:[%s5259_s3 + $0x90] ss:$12 sps:$4 sm:$0xff]   ;;  %v4342_v53 = vld [vmem:[%s5259_s3 + $0xac] ss:$12 sps:$4 sm:$0xff]   ;;  %v4429_v0 = vrot.slane %v511_v62, %v523_v60  ;;  %v4432_v1 = vrot.slane %v511_v62, %v4422_v61  ;;  %v4435_v4 = vrot.slane %v511_v62, %v4427_v63 }
  0x2b   : > { %3312 = vmatpush3.bf16.msra.mxu1 %v3557_v14  ;;  %714 = vmatprep.subr.bf16.mxu0 %v3559_v16  ;;  %v4356_v55 = vld [vmem:[%s5259_s3 + $0xa8] ss:$12 sps:$4 sm:$0xff]   ;;  %v4363_v56 = vld [vmem:[%s5259_s3 + $0x98] ss:$12 sps:$4 sm:$0xff]   ;;  %v4373_v57 = vld [vmem:[%s5259_s3 + $0xb0] ss:$12 sps:$4 sm:$0xff]  }
  0x2c   : > { %3313 = vmatprep.subr.bf16.mxu1 %v3561_v17  ;;  %s5316_s14 = smov (!%p456_p11, %s3040_s14), 3  ;;  %s447_s24 = sand.u32 1, %s3999_s26  }
  0x2d   : > { %s3041_s19 = sshll.u32 %s5316_s14, 2  ;;  %s3037_s15 = sshll.u32 %s447_s24, 5 }
  0x2e   : > { %715 = vmatpush1.bf16.msra.mxu0 %v3562_v19  ;;  %s459_s23 = scalar_lea.vmem %s5257_s1, %s3041_s19  ;;  %s3214_s14 = sshll.u32 %s4106_s29, 9 }
  0x2f   : > { %3314 = vmatpush3.bf16.msra.mxu1 %v3561_v17  ;;  %716 = vmatprep.subr.bf16.mxu0 %v3563_v20  ;;  %s449_s16 = scalar_lea.vmem [#allocation3], %s3037_s15  ;;  %s5211_s17 = scalar_lea.hbm %s5269_s13, %s3214_s14 }
  0x30   : > { %3315 = vmatprep.subr.bf16.mxu1 %v3565_v21  ;;  %s2952_s19 = sshll.u32 %s449_s16, 4  ;;  %s5215_s29 = scalar_lea.sflag [#allocation4], %s447_s24  ;;  %s5213_s19 = int_to_ptr.vmem [resolvable:$true] %s2952_s19 }
  0x31   : > { %s3945_s30 = scalar_lea.vmem %s5213_s19, 512 }
  0x32   : > { %717 = vmatpush1.bf16.msra.mxu0 %v3566_v22  ;;  %p3946_p12 = scmp.ne.s32.totalorder %s5213_s19, %s3945_s30 }
  0x33   : > { %3316 = vmatpush3.bf16.msra.mxu1 %v3565_v21  ;;  %718 = vmatprep.subr.bf16.mxu0 %v3567_v23 }
  0x34   : > { %3317 = vmatprep.subr.bf16.mxu1 %v3569_v24  ;;  %p3947_p13 = pnand %p3946_p12, %p4123_p5 }
  0x36   : > { %719 = vmatpush1.bf16.msra.mxu0 %v3570_v25  ;;  %p3948_p0 = pneg %p3947_p13 }
  0x37   : > { %3318 = vmatpush3.bf16.msra.mxu1 %v3569_v24  ;;  %3335 = vmatprep.subr.bf16.mxu0 %v5276_v30 }
  0x38   : > { %1135 = vmatprep.subr.bf16.mxu1 %v4217_v26 }
  0x39   : > { %737 = vmatmul.mubr.bf16.vlgmr.msra.gmra.mrb[0].mxu0 %v3571_v18 }
  0x3a   : > { %3320 = vmatmul.mubr.bf16.vlgmr.msra.gmra.mrb[0].mxu1 %v3572_v27  ;;  %3336 = vmatpush3.bf16.msra.mxu0 %v4228_v29 }
  0x3b   : > { %1136 = vmatpush1.bf16.msra.mxu1 %v4223_v28  ;;  %746 = vmatprep.mubr.bf16.mxu0 %v5274_v2 }
  0x3c   : > { %1137 = vmatprep.subr.bf16.mxu1 %v4235_v31  ;;  %3323 = vmatprep.mubr.bf16.mxu1 %v3580_v32 }
  0x3d   : > { %3337 = vmatprep.subr.bf16.mxu0 %v5276_v30 }
  0x3e   : > { %3338 = vmatpush3.bf16.msra.mxu0 %v4248_v34 }
  0x3f   : > { %1138 = vmatpush1.bf16.msra.mxu1 %v4241_v33  ;;  %3339 = vmatprep.subr.bf16.mxu0 %v5276_v30 }
  0x40   : > { %1139 = vmatprep.subr.bf16.mxu1 %v4255_v35 }
  0x41   : > { %747 = vmatmul.mubr.bf16.gmra.mrb[4].mxu0 %v3572_v27 }
  0x42   : > { %3324 = vmatmul.mubr.bf16.gmra.mrb[4].mxu1 %v3581_v36  ;;  %756 = vmatprep.mubr.bf16.mxu0 %v5274_v2 }
  0x43   : > { %1140 = vmatpush1.bf16.msra.mxu1 %v4262_v37  ;;  %3327 = vmatprep.mubr.bf16.mxu1 %v3589_v39 }
  0x44   : > { %1141 = vmatprep.subr.bf16.mxu1 %v4269_v38  ;;  %3340 = vmatpush3.bf16.msra.mxu0 %v4277_v40 }
  0x45   : > { %3341 = vmatprep.subr.bf16.mxu0 %v5276_v30 }
  0x47   : > { %1142 = vmatpush1.bf16.msra.mxu1 %v4283_v41 }
  0x48   : > { %1143 = vmatprep.subr.bf16.mxu1 %v4291_v43  ;;  %3342 = vmatpush3.bf16.msra.mxu0 %v4296_v44 }
  0x49   : > { %757 = vmatmul.mubr.bf16.gmra.mrb[8].mxu0 %v3580_v32  ;;  %3343 = vmatprep.subr.bf16.mxu0 %v5276_v30 }
  0x4a   : > { %3328 = vmatmul.mubr.bf16.gmra.mrb[8].mxu1 %v3590_v42  ;;  %766 = vmatprep.mubr.bf16.mxu0 %v5274_v2 }
  0x4b   : > { %1144 = vmatpush1.bf16.msra.mxu1 %v4301_v45  ;;  %3331 = vmatprep.mubr.bf16.mxu1 %v3598_v47 }
  0x4c   : > { %1145 = vmatprep.subr.bf16.mxu1 %v4307_v46  ;;  %3344 = vmatpush3.bf16.msra.mxu0 %v4316_v48 }
  0x4d   : > { %3345 = vmatprep.subr.bf16.mxu0 %v5276_v30 }
  0x4f   : > { %1146 = vmatpush1.bf16.msra.mxu1 %v4321_v49 }
  0x50   : > { %1147 = vmatprep.subr.bf16.mxu1 %v4327_v50  ;;  %3346 = vmatpush3.bf16.msra.mxu0 %v4350_v54 }
  0x51   : > { %767 = vmatmul.mubr.bf16.gmra.mrb[12].mxu0 %v3581_v36  ;;  %3347 = vmatprep.subr.bf16.mxu0 %v5276_v30 }
  0x52   : > { %3332 = vmatmul.mubr.bf16.gmra.mrb[12].mxu1 %v3599_v51  ;;  %776 = vmatprep.mubr.bf16.mxu0 %v5274_v2 }
  0x53   : > { %1148 = vmatpush1.bf16.msra.mxu1 %v4336_v52  ;;  %1167 = vmatprep.mubr.bf16.mxu1 %v5274_v2 }
  0x54   : > { %1149 = vmatprep.subr.bf16.mxu1 %v4342_v53  ;;  %3348 = vmatpush3.bf16.msra.mxu0 %v4363_v56 }
  0x55   : > { %3349 = vmatprep.subr.bf16.mxu0 %v5276_v30 }
  0x57   : > { %1150 = vmatpush1.bf16.msra.mxu1 %v4356_v55 }
  0x58   : > { %1276 = vmatprep.subr.bf16.mxu1 %v4217_v26  ;;  %3350 = vmatpush3.bf16.msra.mxu0 %v4373_v57 }
  0x59   : > { %777 = vmatmul.mubr.bf16.gmra.mrb[16].mxu0 %v3589_v39  ;;  %3355 = vmatprep.subr.bf16.mxu0 %v5276_v30 }
  0x5a   : > { %1168 = vmatmul.mubr.bf16.vlgmr.msra.gmra.mrb[16].mxu1 %v5274_v2  ;;  %786 = vmatprep.mubr.bf16.mxu0 %v5274_v2 }
  0x5b   : > { %1277 = vmatpush1.bf16.msra.mxu1 %v4223_v28  ;;  %1308 = vmatprep.mubr.bf16.mxu1 %v5274_v2 }
  0x5c   : > { %1278 = vmatprep.subr.bf16.mxu1 %v4235_v31 }
  0x5f   : > { %1279 = vmatpush1.bf16.msra.mxu1 %v4241_v33 }
  0x60   : > { %1280 = vmatprep.subr.bf16.mxu1 %v4255_v35 }
  0x61   : > { %787 = vmatmul.mubr.bf16.gmra.mrb[20].mxu0 %v3590_v42 }
  0x62   : > { %796 = vmatprep.mubr.bf16.mxu0 %v5274_v2 }
  0x63   : > { %1281 = vmatpush1.bf16.msra.mxu1 %v4262_v37 }
  0x64   : > { %1282 = vmatprep.subr.bf16.mxu1 %v4269_v38 }
  0x67   : > { %1283 = vmatpush1.bf16.msra.mxu1 %v4283_v41 }
  0x68   : > { %1284 = vmatprep.subr.bf16.mxu1 %v4291_v43 }
  0x69   : > { %797 = vmatmul.mubr.bf16.gmra.mrb[24].mxu0 %v3598_v47 }
  0x6a   : > { %806 = vmatprep.mubr.bf16.mxu0 %v5274_v2 }
  0x6b   : > { %1285 = vmatpush1.bf16.msra.mxu1 %v4301_v45 }
  0x6c   : > { %1286 = vmatprep.subr.bf16.mxu1 %v4307_v46 }
  0x6f   : > { %1287 = vmatpush1.bf16.msra.mxu1 %v4321_v49 }
  0x70   : > { %1288 = vmatprep.subr.bf16.mxu1 %v4327_v50 }
  0x71   : > { %807 = vmatmul.mubr.bf16.gmra.mrb[28].mxu0 %v3599_v51 }
  0x72   : > { %3351 = vmatprep.mubr.msk.bf16.mxu0 %vm4011_vm0, %v5276_v30 }
  0x73   : > { %1289 = vmatpush1.bf16.msra.mxu1 %v4336_v52 }
  0x74   : > { %1290 = vmatprep.subr.bf16.mxu1 %v4342_v53 }
  0x77   : > { %1291 = vmatpush1.bf16.msra.mxu1 %v4356_v55 }
  0x78   : > { %1417 = vmatprep.subr.bf16.mxu1 %v4217_v26 }
  0x79   : > { %3352 = vmatmul.mubr.bf16.vlgmr.msra.gmra.mrb[32].mxu0 %v5274_v2 }
  0x7a   : > { %3356 = vmatpush3.bf16.msra.mxu0 %v4228_v29  ;;  %3371 = vmatprep.mubr.msk.bf16.mxu0 %vm4011_vm0, %v5276_v30 }
  0x7b   : > { %3357 = vmatprep.subr.bf16.mxu0 %v5276_v30 }
  0x7e   : > { %3358 = vmatpush3.bf16.msra.mxu0 %v4248_v34 }
  0x7f   : > { %3359 = vmatprep.subr.bf16.mxu0 %v5276_v30 }
  0x82   : > { %3360 = vmatpush3.bf16.msra.mxu0 %v4277_v40 }
  0x83   : > { %3361 = vmatprep.subr.bf16.mxu0 %v5276_v30 }
  0x86   : > { %3362 = vmatpush3.bf16.msra.mxu0 %v4296_v44 }
  0x87   : > { %3363 = vmatprep.subr.bf16.mxu0 %v5276_v30 }
  0x8a   : > { %3364 = vmatpush3.bf16.msra.mxu0 %v4316_v48 }
  0x8b   : > { %3365 = vmatprep.subr.bf16.mxu0 %v5276_v30 }
  0x8e   : > { %3366 = vmatpush3.bf16.msra.mxu0 %v4350_v54 }
  0x8f   : > { %3367 = vmatprep.subr.bf16.mxu0 %v5276_v30 }
  0x92   : > { %3368 = vmatpush3.bf16.msra.mxu0 %v4363_v56 }
  0x93   : > { %3369 = vmatprep.subr.bf16.mxu0 %v5276_v30 }
  0x96   : > { %3370 = vmatpush3.bf16.msra.mxu0 %v4373_v57 }
  0x97   : > { %3375 = vmatprep.subr.bf16.mxu0 %v5276_v30 }
 0x10c   : > { %v738_v3 = vpop.f32.mrb[0].mxu0 }
 0x10d   : > { %v3321_v5 = vpop.f32.mrb[0].mxu1  ;;  %v740_v6 = vpop.f32.mrb[1].mxu0  ;;  %v739_v12 = vadd.f32 %v738_v3, %v4432_v1 }
 0x10e   : > { %v860_v7 = vadd.f32 %v3321_v5, %v4429_v0  ;;  %v851_v8 = vpop.f32.mrb[1].mxu1  ;;  %v742_v9 = vpop.f32.mrb[2].mxu0  ;;  %v741_v17 = vadd.f32 %v740_v6, %v4435_v4 }
 0x10f   : > { %v852_v10 = vadd.f32 %v851_v8, %v4429_v0  ;;  %v3322_v11 = vpop.f32.mrb[2].mxu1  ;;  %v743_v13 = vadd.f32 %v742_v9, %v4432_v1  ;;  %v744_v14 = vpop.f32.mrb[3].mxu0 }
 0x110   : > { %v863_v15 = vadd.f32 %v3322_v11, %v4429_v0  ;;  %v854_v16 = vpop.f32.mrb[3].mxu1  ;;  %v745_v18 = vadd.f32 %v744_v14, %v4435_v4 }
 0x111   : > { %v855_v19 = vadd.f32 %v854_v16, %v4429_v0  ;;  %v4445_v20 = vpack.c.bf16 %v743_v13, %v739_v12 }
 0x112   : > { %v4447_v21 = vpack.c.bf16 %v863_v15, %v860_v7  ;;  %v4449_v22 = vpack.c.bf16 %v745_v18, %v741_v17 }
 0x113   : > { %v4451_v23 = vpack.c.bf16 %v855_v19, %v852_v10 }
 0x114   : > { %v748_v24 = vpop.f32.mrb[4].mxu0 }
 0x115   : > { %v3325_v25 = vpop.f32.mrb[4].mxu1  ;;  %v749_v27 = vadd.f32 %v748_v24, %v4432_v1  ;;  %v750_v32 = vpop.f32.mrb[5].mxu0 }
 0x116   : > { %v876_v36 = vadd.f32 %v3325_v25, %v4429_v0  ;;  %v867_v39 = vpop.f32.mrb[5].mxu1  ;;  %v751_v42 = vadd.f32 %v750_v32, %v4435_v4  ;;  %v752_v47 = vpop.f32.mrb[6].mxu0 }
 0x117   : > { %v868_v51 = vadd.f32 %v867_v39, %v4429_v0  ;;  %v3326_v58 = vpop.f32.mrb[6].mxu1  ;;  %v753_v59 = vadd.f32 %v752_v47, %v4432_v1  ;;  %v754_v60 = vpop.f32.mrb[7].mxu0 }
 0x118   : > { %v879_v62 = vadd.f32 %v3326_v58, %v4429_v0  ;;  %v870_v3 = vpop.f32.mrb[7].mxu1  ;;  %v755_v5 = vadd.f32 %v754_v60, %v4435_v4 }
 0x119   : > { %v871_v6 = vadd.f32 %v870_v3, %v4429_v0  ;;  %v4461_v7 = vpack.c.bf16 %v753_v59, %v749_v27 }
 0x11a   : > { %v4463_v8 = vpack.c.bf16 %v879_v62, %v876_v36  ;;  %v4465_v9 = vpack.c.bf16 %v755_v5, %v751_v42 }
 0x11b   : > { %v4467_v10 = vpack.c.bf16 %v871_v6, %v868_v51 }
 0x11c   : > { %v758_v11 = vpop.f32.mrb[8].mxu0 }
 0x11d   : > { %v3329_v12 = vpop.f32.mrb[8].mxu1  ;;  %v759_v13 = vadd.f32 %v758_v11, %v4432_v1  ;;  %v760_v14 = vpop.f32.mrb[9].mxu0 }
 0x11e   : > { %v892_v15 = vadd.f32 %v3329_v12, %v4429_v0  ;;  %v883_v16 = vpop.f32.mrb[9].mxu1  ;;  %v761_v17 = vadd.f32 %v760_v14, %v4435_v4  ;;  %v762_v18 = vpop.f32.mrb[10].mxu0 }
 0x11f   : > { %v884_v19 = vadd.f32 %v883_v16, %v4429_v0  ;;  %v3330_v24 = vpop.f32.mrb[10].mxu1  ;;  %v763_v25 = vadd.f32 %v762_v18, %v4432_v1  ;;  %v764_v27 = vpop.f32.mrb[11].mxu0 }
 0x120   : > { %v895_v32 = vadd.f32 %v3330_v24, %v4429_v0  ;;  %v886_v36 = vpop.f32.mrb[11].mxu1  ;;  %v765_v39 = vadd.f32 %v764_v27, %v4435_v4 }
 0x121   : > { %v887_v42 = vadd.f32 %v886_v36, %v4429_v0  ;;  %v4477_v47 = vpack.c.bf16 %v763_v25, %v759_v13 }
 0x122   : > { %v4479_v51 = vpack.c.bf16 %v895_v32, %v892_v15  ;;  %v4481_v58 = vpack.c.bf16 %v765_v39, %v761_v17 }
 0x123   : > { %v4483_v59 = vpack.c.bf16 %v887_v42, %v884_v19  ;;  %v1219_v42 = vunpack.c.l.bf16 %v4445_v20 }
 0x124   : > { %v768_v60 = vpop.f32.mrb[12].mxu0 }
 0x125   : > { %v3333_v62 = vpop.f32.mrb[12].mxu1  ;;  %v769_v3 = vadd.f32 %v768_v60, %v4432_v1  ;;  %v770_v5 = vpop.f32.mrb[13].mxu0 }
 0x126   : > { %v908_v6 = vadd.f32 %v3333_v62, %v4429_v0  ;;  %v899_v11 = vpop.f32.mrb[13].mxu1  ;;  %v771_v12 = vadd.f32 %v770_v5, %v4435_v4  ;;  %v772_v14 = vpop.f32.mrb[14].mxu0  ;;  %v1235_v5 = vunpack.c.l.bf16 %v4449_v22 }
 0x127   : > { %v900_v13 = vadd.f32 %v899_v11, %v4429_v0  ;;  %v3334_v16 = vpop.f32.mrb[14].mxu1  ;;  %v773_v15 = vadd.f32 %v772_v14, %v4432_v1  ;;  %v774_v17 = vpop.f32.mrb[15].mxu0 }
 0x128   : > { %v911_v18 = vadd.f32 %v3334_v16, %v4429_v0  ;;  %v902_v19 = vpop.f32.mrb[15].mxu1  ;;  %v775_v24 = vadd.f32 %v774_v17, %v4435_v4 }
 0x129   : > { %v903_v25 = vadd.f32 %v902_v19, %v4429_v0  ;;  %v4493_v27 = vpack.c.bf16 %v773_v15, %v769_v3  ;;  %v1220_v0 = vunpack.c.h.bf16 %v4445_v20 }
 0x12a   : > { %v4495_v32 = vpack.c.bf16 %v911_v18, %v908_v6  ;;  %v4497_v36 = vpack.c.bf16 %v775_v24, %v771_v12 }
 0x12b   : > { %v4499_v39 = vpack.c.bf16 %v903_v25, %v900_v13  ;;  %v1236_v13 = vunpack.c.h.bf16 %v4449_v22 }
 0x12c   : > { %5295 = vst [vmem:[#allocation12_spill] sm:$0xff] %v4495_v32  ;;  %v778_v60 = vpop.f32.mrb[16].mxu0 }
 0x12d   : > { %5296 = vst [vmem:[#allocation13_spill] sm:$0xff] %v4499_v39  ;;  %v1169_v62 = vpop.f32.mrb[16].mxu1  ;;  %v779_v11 = vadd.f32 %v778_v60, %v4432_v1  ;;  %v780_v16 = vpop.f32.mrb[17].mxu0 }
 0x12e   : > { %v1221_v14 = vadd.f32 %v1219_v42, %v1169_v62  ;;  %v1171_v17 = vpop.f32.mrb[17].mxu1  ;;  %v781_v3 = vadd.f32 %v780_v16, %v4435_v4  ;;  %v782_v12 = vpop.f32.mrb[18].mxu0 }
 0x12f   : > { %v1237_v6 = vadd.f32 %v1235_v5, %v1171_v17  ;;  %v1173_v15 = vpop.f32.mrb[18].mxu1  ;;  %v783_v19 = vadd.f32 %v782_v12, %v4432_v1  ;;  %v784_v25 = vpop.f32.mrb[19].mxu0 }
 0x130   : > { %v3099_v18 = vmul.f32 -1.442695, %v1221_v14  ;;  %v1222_v24 = vadd.f32 %v1220_v0, %v1173_v15  ;;  %v1175_v2 = vpop.f32.mrb[19].mxu1  ;;  %v785_v60 = vadd.f32 %v784_v25, %v4435_v4 }
 0x131   : > { %v1238_v42 = vadd.f32 %v1236_v13, %v1175_v2  ;;  %v4509_v62 = vpack.c.bf16 %v783_v19, %v779_v11  ;;  %v3101_v11 = vmul.f32 -1.442695, %v1237_v6 }
 0x132   : > { %v3100_v30 = vmul.f32 -1.442695, %v1222_v24  ;;  %v4511_v20 = vpack.c.bf16 %v785_v60, %v781_v3  ;;  %3708 = vpow2.f32 %v3099_v18 }
 0x133   : > { %v3102_v3 = vmul.f32 -1.442695, %v1238_v42 }
 0x134   : > { %v788_v5 = vpop.f32.mrb[20].mxu0  ;;  %3710 = vpow2.f32 %v3100_v30 }
 0x135   : > { %v789_v16 = vadd.f32 %v788_v5, %v4432_v1  ;;  %v790_v22 = vpop.f32.mrb[21].mxu0  ;;  %3712 = vpow2.f32 %v3101_v11 }
 0x136   : > { %v791_v14 = vadd.f32 %v790_v22, %v4435_v4  ;;  %v792_v17 = vpop.f32.mrb[22].mxu0  ;;  %3714 = vpow2.f32 %v3102_v3 }
 0x137   : > { %v793_v0 = vadd.f32 %v792_v17, %v4432_v1  ;;  %v794_v12 = vpop.f32.mrb[23].mxu0 }
 0x138   : > { %v795_v15 = vadd.f32 %v794_v12, %v4435_v4 }
 0x139   : > { %v4517_v2 = vpack.c.bf16 %v793_v0, %v789_v16 }
 0x13a   : > { %v4519_v13 = vpack.c.bf16 %v795_v15, %v791_v14 }
 0x13c   : > { %v798_v18 = vpop.f32.mrb[24].mxu0  ;;  %v3709_v19 = vpop.eup %3708 }
 0x13d   : > { %v799_v30 = vadd.f32 %v798_v18, %v4432_v1  ;;  %v800_v24 = vpop.f32.mrb[25].mxu0  ;;  %v1229_v12 = vadd.f32 1.0, %v3709_v19 }
 0x13e   : > { %v801_v25 = vadd.f32 %v800_v24, %v4435_v4  ;;  %v802_v60 = vpop.f32.mrb[26].mxu0  ;;  %v3711_v5 = vpop.eup %3710 }
 0x13f   : > { %v803_v22 = vadd.f32 %v802_v60, %v4432_v1  ;;  %v804_v17 = vpop.f32.mrb[27].mxu0  ;;  %v1230_v42 = vadd.f32 1.0, %v3711_v5  ;;  %3716 = vrcp.f32 %v1229_v12  ;;  %v3713_v3 = vpop.eup %3712 }
 0x140   : > { %v805_v6 = vadd.f32 %v804_v17, %v4435_v4  ;;  %v3715_v5 = vpop.eup %3714  ;;  %v1245_v12 = vadd.f32 1.0, %v3713_v3 }
 0x141   : > { %v4525_v16 = vpack.c.bf16 %v803_v22, %v799_v30  ;;  %3718 = vrcp.f32 %v1230_v42  ;;  %v4540_v22 = vld [vmem:[%s5261_s5] ss:$0 sm:$0xff]  ;;  %v1246_v42 = vadd.f32 1.0, %v3715_v5 }
 0x142   : > { %v4527_v14 = vpack.c.bf16 %v805_v6, %v801_v25  ;;  %3720 = vrcp.f32 %v1245_v12 }
 0x143   : > { %3722 = vrcp.f32 %v1246_v42  ;;  %v1376_v42 = vunpack.c.l.bf16 %v4465_v9 }
 0x144   : > { %5297 = vst [vmem:[#allocation14_spill] sm:$0xff] %v4527_v14  ;;  %v808_v0 = vpop.f32.mrb[28].mxu0 }
 0x145   : > { %v809_v15 = vadd.f32 %v808_v0, %v4432_v1  ;;  %v810_v11 = vpop.f32.mrb[29].mxu0 }
 0x146   : > { %v811_v18 = vadd.f32 %v810_v11, %v4435_v4  ;;  %v812_v24 = vpop.f32.mrb[30].mxu0 }
 0x147   : > { %v813_v60 = vadd.f32 %v812_v24, %v4432_v1  ;;  %v814_v19 = vpop.f32.mrb[31].mxu0 }
 0x148   : > { %v815_v17 = vadd.f32 %v814_v19, %v4435_v4  ;;  %v1255_v4 = vunpack.c.l.bf16 %v4451_v23 }
 0x149   : > { %v4533_v30 = vpack.c.bf16 %v813_v60, %v809_v15  ;;  %v3717_v11 = vpop.eup %3716 }
 0x14a   : > { %v4535_v25 = vpack.c.bf16 %v815_v17, %v811_v18  ;;  %v1256_v17 = vunpack.c.h.bf16 %v4451_v23 }
 0x14b   : > { %5298 = vst [vmem:[#allocation15_spill] sm:$0xff] %v4533_v30  ;;  %v3719_v19 = vpop.eup %3718 }
 0x14c   : > { %5299 = vst [vmem:[#allocation16_spill] sm:$0xff] %v4535_v25  ;;  %v1212_v6 = vpop.f32.mrb[32].mxu0 }
 0x14d   : > { %v1251_v0 = vadd.f32 %v4540_v22, %v1212_v6  ;;  %v3353_v1 = vpop.f32.mrb[33].mxu0  ;;  %v3721_v6 = vpop.eup %3720 }
 0x14e   : > { %v1215_v24 = vpop.f32.mrb[34].mxu0  ;;  %v3723_v1 = vpop.eup %3722  ;;  %v1261_v63 = vsub.f32 1.0, %v3721_v6  ;;  %v1265_v12 = vmul.f32 0.0, %v3721_v6  ;;  %v1377_v6 = vunpack.c.h.bf16 %v4465_v9 }
 0x14f   : > { %v1253_v15 = vmul.f32 %v3717_v11, %v1251_v0  ;;  %v1252_v18 = vadd.f32 %v4540_v22, %v1215_v24  ;;  %v3354_v60 = vpop.f32.mrb[35].mxu0  ;;  %v1262_v25 = vsub.f32 1.0, %v3723_v1  ;;  %v1266_v24 = vmul.f32 0.0, %v3723_v1 }
 0x151   : > { %v1257_v61 = vadd.f32 %v1255_v4, %v1253_v15  ;;  %v1254_v3 = vmul.f32 %v3719_v19, %v1252_v18  ;;  %v1361_v19 = vunpack.c.h.bf16 %v4461_v7 }
 0x153   : > { %3724 = vtanh.f32 %v1257_v61  ;;  %v1258_v5 = vadd.f32 %v1256_v17, %v1254_v3  ;;  %v5300_v61 = vmov 0.0  }
 0x155   : > { %3726 = vtanh.f32 %v1258_v5 }
 0x15d   : > { %v3725_v32 = vpop.eup %3724 }
 0x15e   : > { %v1263_v30 = vmul.f32 %v3725_v32, %v1261_v63  ;;  %v5301_v63 = vmov 0   ;;  %v1360_v32 = vunpack.c.l.bf16 %v4461_v7 }
 0x15f   : > { %v3727_v0 = vpop.eup %3726 }
 0x160   : > { %v1264_v11 = vmul.f32 %v3727_v0, %v1262_v25  ;;  %v4546_v60 = vadd.f32 %v1265_v12, %v1263_v30 }
 0x162   : > { %v4548_v39 = vadd.f32 %v1266_v24, %v1264_v11 }
 0x164   : > { %v1275_v23 = vpack.c.bf16 %v4548_v39, %v4546_v60 }
 0x166   : > { %1309 = vmatmul.mubr.bf16.vlgmr.msra.gmra.mrb[20].mxu1 %v1275_v23  ;;  %3372 = vmatmul.mubr.bf16.vlgmr.msra.gmra.mrb[36].mxu0 %v1275_v23 }
 0x167   : > { %1418 = vmatpush1.bf16.msra.mxu1 %v4223_v28  ;;  %3376 = vmatpush3.bf16.msra.mxu0 %v4228_v29 }
 0x168   : > { %1419 = vmatprep.subr.bf16.mxu1 %v4235_v31  ;;  %3377 = vmatprep.subr.bf16.mxu0 %v5300_v61 }
 0x169   : > { %1449 = vmatprep.mubr.bf16.mxu1 %v5301_v63  ;;  %3391 = vmatprep.mubr.msk.bf16.mxu0 %vm4011_vm0, %v5300_v61 }
 0x16b   : > { %1420 = vmatpush1.bf16.msra.mxu1 %v4241_v33  ;;  %3378 = vmatpush3.bf16.msra.mxu0 %v4248_v34 }
 0x16c   : > { %1421 = vmatprep.subr.bf16.mxu1 %v4255_v35  ;;  %3379 = vmatprep.subr.bf16.mxu0 %v5300_v61 }
 0x16f   : > { %1422 = vmatpush1.bf16.msra.mxu1 %v4262_v37  ;;  %3380 = vmatpush3.bf16.msra.mxu0 %v4277_v40 }
 0x170   : > { %1423 = vmatprep.subr.bf16.mxu1 %v4269_v38  ;;  %3381 = vmatprep.subr.bf16.mxu0 %v5300_v61 }
 0x173   : > { %1424 = vmatpush1.bf16.msra.mxu1 %v4283_v41  ;;  %3382 = vmatpush3.bf16.msra.mxu0 %v4296_v44 }
 0x174   : > { %1425 = vmatprep.subr.bf16.mxu1 %v4291_v43  ;;  %3383 = vmatprep.subr.bf16.mxu0 %v5300_v61 }
 0x177   : > { %1426 = vmatpush1.bf16.msra.mxu1 %v4301_v45  ;;  %3384 = vmatpush3.bf16.msra.mxu0 %v4316_v48 }
 0x178   : > { %1427 = vmatprep.subr.bf16.mxu1 %v4307_v46  ;;  %3385 = vmatprep.subr.bf16.mxu0 %v5300_v61 }
 0x17b   : > { %1428 = vmatpush1.bf16.msra.mxu1 %v4321_v49  ;;  %3386 = vmatpush3.bf16.msra.mxu0 %v4350_v54 }
 0x17c   : > { %1429 = vmatprep.subr.bf16.mxu1 %v4327_v50  ;;  %3387 = vmatprep.subr.bf16.mxu0 %v5300_v61 }
 0x17f   : > { %1430 = vmatpush1.bf16.msra.mxu1 %v4336_v52  ;;  %3388 = vmatpush3.bf16.msra.mxu0 %v4363_v56 }
 0x180   : > { %1431 = vmatprep.subr.bf16.mxu1 %v4342_v53  ;;  %3389 = vmatprep.subr.bf16.mxu0 %v5300_v61 }
 0x183   : > { %1432 = vmatpush1.bf16.msra.mxu1 %v4356_v55  ;;  %3390 = vmatpush3.bf16.msra.mxu0 %v4373_v57 }
 0x184   : > { %1558 = vmatprep.subr.bf16.mxu1 %v4217_v26  ;;  %3395 = vmatprep.subr.bf16.mxu0 %v5300_v61 }
 0x239   : > { %v1310_v30 = vpop.f32.mrb[20].mxu1  ;;  %v1353_v25 = vpop.f32.mrb[36].mxu0 }
 0x23a   : > { %v1362_v4 = vadd.f32 %v1360_v32, %v1310_v30  ;;  %v1312_v15 = vpop.f32.mrb[21].mxu1  ;;  %v3373_v18 = vpop.f32.mrb[37].mxu0 }
 0x23b   : > { %v1378_v17 = vadd.f32 %v1376_v42, %v1312_v15  ;;  %v1314_v3 = vpop.f32.mrb[22].mxu1  ;;  %v1356_v5 = vpop.f32.mrb[38].mxu0  ;;  %v1392_v18 = vadd.f32 %v4540_v22, %v1353_v25 }
 0x23c   : > { %v3103_v1 = vmul.f32 -1.442695, %v1362_v4  ;;  %v1363_v26 = vadd.f32 %v1361_v19, %v1314_v3  ;;  %v1316_v12 = vpop.f32.mrb[23].mxu1  ;;  %v3374_v0 = vpop.f32.mrb[39].mxu0 }
 0x23d   : > { %v1379_v11 = vadd.f32 %v1377_v6, %v1316_v12  ;;  %v3105_v23 = vmul.f32 -1.442695, %v1378_v17  ;;  %v1396_v6 = vunpack.c.l.bf16 %v4447_v21  ;;  %v1393_v17 = vadd.f32 %v4540_v22, %v1356_v5 }
 0x23e   : > { %3728 = vpow2.f32 %v3103_v1  ;;  %v3104_v24 = vmul.f32 -1.442695, %v1363_v26  ;;  %v1397_v26 = vunpack.c.h.bf16 %v4447_v21 }
 0x23f   : > { %v3106_v14 = vmul.f32 -1.442695, %v1379_v11 }
 0x240   : > { %3730 = vpow2.f32 %v3104_v24 }
 0x241   : > { %3732 = vpow2.f32 %v3105_v23 }
 0x242   : > { %3734 = vpow2.f32 %v3106_v14 }
 0x248   : > { %v3729_v32 = vpop.eup %3728 }
 0x249   : > { %v1370_v30 = vadd.f32 1.0, %v3729_v32 }
 0x24a   : > { %v3731_v7 = vpop.eup %3730 }
 0x24b   : > { %3736 = vrcp.f32 %v1370_v30  ;;  %v1371_v42 = vadd.f32 1.0, %v3731_v7  ;;  %v3733_v15 = vpop.eup %3732 }
 0x24c   : > { %v3735_v9 = vpop.eup %3734  ;;  %v1386_v4 = vadd.f32 1.0, %v3733_v15 }
 0x24d   : > { %3738 = vrcp.f32 %v1371_v42  ;;  %v1387_v19 = vadd.f32 1.0, %v3735_v9 }
 0x24e   : > { %3740 = vrcp.f32 %v1386_v4 }
 0x24f   : > { %3742 = vrcp.f32 %v1387_v19 }
 0x255   : > { %v3737_v3 = vpop.eup %3736 }
 0x256   : > { %v1394_v1 = vmul.f32 %v3737_v3, %v1392_v18 }
 0x257   : > { %v3739_v14 = vpop.eup %3738 }
 0x258   : > { %v1398_v12 = vadd.f32 %v1396_v6, %v1394_v1  ;;  %v1395_v0 = vmul.f32 %v3739_v14, %v1393_v17  ;;  %v3741_v24 = vpop.eup %3740 }
 0x259   : > { %v3743_v23 = vpop.eup %3742  ;;  %v1402_v25 = vsub.f32 1.0, %v3741_v24  ;;  %v1406_v42 = vmul.f32 %v3741_v24, %v4546_v60 }
 0x25a   : > { %3744 = vtanh.f32 %v1398_v12  ;;  %v1399_v11 = vadd.f32 %v1397_v26, %v1395_v0  ;;  %v1403_v30 = vsub.f32 1.0, %v3743_v23  ;;  %v1407_v5 = vmul.f32 %v3743_v23, %v4548_v39 }
 0x25b   : > { %v1537_v0 = vunpack.c.l.bf16 %v4467_v10 }
 0x25c   : > { %3746 = vtanh.f32 %v1399_v11 }
 0x264   : > { %v3745_v32 = vpop.eup %3744 }
 0x265   : > { %v1404_v7 = vmul.f32 %v3745_v32, %v1402_v25  ;;  %v1538_v25 = vunpack.c.h.bf16 %v4467_v10 }
 0x266   : > { %v3747_v15 = vpop.eup %3746 }
 0x267   : > { %v1405_v9 = vmul.f32 %v3747_v15, %v1403_v30  ;;  %v4597_v4 = vadd.f32 %v1406_v42, %v1404_v7 }
 0x269   : > { %v4599_v21 = vadd.f32 %v1407_v5, %v1405_v9 }
 0x26b   : > { %v1416_v18 = vpack.c.bf16 %v4599_v21, %v4597_v4 }
 0x26d   : > { %1450 = vmatmul.mubr.bf16.vlgmr.msra.gmra.mrb[24].mxu1 %v1416_v18  ;;  %3392 = vmatmul.mubr.bf16.vlgmr.msra.gmra.mrb[40].mxu0 %v1416_v18 }
 0x26e   : > { %1559 = vmatpush1.bf16.msra.mxu1 %v4223_v28  ;;  %3396 = vmatpush3.bf16.msra.mxu0 %v4228_v29  ;;  %v4639_v28 = vld [vmem:[%s5259_s3 + $0x4] ss:$12 sps:$4 sm:$0xff]   ;;  %v1501_v29 = vunpack.c.l.bf16 %v4477_v47 }
 0x26f   : > { %1560 = vmatprep.subr.bf16.mxu1 %v4235_v31  ;;  %3397 = vmatprep.subr.bf16.mxu0 %v5300_v61 }
 0x270   : > { %1590 = vmatprep.mubr.bf16.mxu1 %v5301_v63  ;;  %3411 = vmatprep.mubr.msk.bf16.mxu0 %vm4011_vm0, %v5300_v61 }
 0x272   : > { %1561 = vmatpush1.bf16.msra.mxu1 %v4241_v33  ;;  %3398 = vmatpush3.bf16.msra.mxu0 %v4248_v34  ;;  %v1517_v34 = vunpack.c.l.bf16 %v4481_v58 }
 0x273   : > { %1562 = vmatprep.subr.bf16.mxu1 %v4255_v35  ;;  %3399 = vmatprep.subr.bf16.mxu0 %v5300_v61 }
 0x276   : > { %1563 = vmatpush1.bf16.msra.mxu1 %v4262_v37  ;;  %3400 = vmatpush3.bf16.msra.mxu0 %v4277_v40  ;;  %v1502_v40 = vunpack.c.h.bf16 %v4477_v47 }
 0x277   : > { %1564 = vmatprep.subr.bf16.mxu1 %v4269_v38  ;;  %3401 = vmatprep.subr.bf16.mxu0 %v5300_v61 }
 0x27a   : > { %1565 = vmatpush1.bf16.msra.mxu1 %v4283_v41  ;;  %3402 = vmatpush3.bf16.msra.mxu0 %v4296_v44 }
 0x27b   : > { %1566 = vmatprep.subr.bf16.mxu1 %v4291_v43  ;;  %3403 = vmatprep.subr.bf16.mxu0 %v5300_v61 }
 0x27e   : > { %1567 = vmatpush1.bf16.msra.mxu1 %v4301_v45  ;;  %3404 = vmatpush3.bf16.msra.mxu0 %v4316_v48  ;;  %v1518_v45 = vunpack.c.h.bf16 %v4481_v58 }
 0x27f   : > { %1568 = vmatprep.subr.bf16.mxu1 %v4307_v46  ;;  %3405 = vmatprep.subr.bf16.mxu0 %v5300_v61 }
 0x282   : > { %1569 = vmatpush1.bf16.msra.mxu1 %v4321_v49  ;;  %3406 = vmatpush3.bf16.msra.mxu0 %v4350_v54 }
 0x283   : > { %1570 = vmatprep.subr.bf16.mxu1 %v4327_v50  ;;  %3407 = vmatprep.subr.bf16.mxu0 %v5300_v61 }
 0x286   : > { %1571 = vmatpush1.bf16.msra.mxu1 %v4336_v52  ;;  %3408 = vmatpush3.bf16.msra.mxu0 %v4363_v56 }
 0x287   : > { %1572 = vmatprep.subr.bf16.mxu1 %v4342_v53  ;;  %3409 = vmatprep.subr.bf16.mxu0 %v5300_v61 }
 0x28a   : > { %1573 = vmatpush1.bf16.msra.mxu1 %v4356_v55  ;;  %3410 = vmatpush3.bf16.msra.mxu0 %v4373_v57 }
 0x28b   : > { %1699 = vmatprep.subr.bf16.mxu1 %v4639_v28  ;;  %3415 = vmatprep.subr.bf16.mxu0 %v5300_v61 }
 0x340   : > { %v1451_v31 = vpop.f32.mrb[24].mxu1  ;;  %v1494_v33 = vpop.f32.mrb[40].mxu0 }
 0x341   : > { %v1503_v35 = vadd.f32 %v1501_v29, %v1451_v31  ;;  %v1453_v37 = vpop.f32.mrb[25].mxu1  ;;  %v3393_v38 = vpop.f32.mrb[41].mxu0  ;;  %v1533_v14 = vadd.f32 %v4540_v22, %v1494_v33 }
 0x342   : > { %v1519_v41 = vadd.f32 %v1517_v34, %v1453_v37  ;;  %v1455_v43 = vpop.f32.mrb[26].mxu1  ;;  %v1497_v44 = vpop.f32.mrb[42].mxu0 }
 0x343   : > { %v3107_v46 = vmul.f32 -1.442695, %v1503_v35  ;;  %v1504_v48 = vadd.f32 %v1502_v40, %v1455_v43  ;;  %v1457_v49 = vpop.f32.mrb[27].mxu1  ;;  %v3394_v50 = vpop.f32.mrb[43].mxu0  ;;  %v1534_v24 = vadd.f32 %v4540_v22, %v1497_v44  ;;  %v4662_v40 = vld [vmem:[%s5259_s3] ss:$12 sps:$4 sm:$0xff]  }
 0x344   : > { %v1520_v52 = vadd.f32 %v1518_v45, %v1457_v49  ;;  %v3109_v39 = vmul.f32 -1.442695, %v1519_v41  ;;  %v4684_v41 = vld [vmem:[%s5259_s3 + $0x18] ss:$12 sps:$4 sm:$0xff]   ;;  %v4690_v43 = vld [vmem:[%s5259_s3 + $0x20] ss:$12 sps:$4 sm:$0xff]  }
 0x345   : > { %3748 = vpow2.f32 %v3107_v46  ;;  %v3108_v53 = vmul.f32 -1.442695, %v1504_v48  ;;  %v4696_v44 = vld [vmem:[%s5259_s3 + $0x34] ss:$12 sps:$4 sm:$0xff]   ;;  %v4703_v45 = vld [vmem:[%s5259_s3 + $0x30] ss:$12 sps:$4 sm:$0xff]  }
 0x346   : > { %v3110_v60 = vmul.f32 -1.442695, %v1520_v52  ;;  %v4709_v46 = vld [vmem:[%s5259_s3 + $0x38] ss:$12 sps:$4 sm:$0xff]   ;;  %v4722_v49 = vld [vmem:[%s5259_s3 + $0x48] ss:$12 sps:$4 sm:$0xff]  }
 0x347   : > { %3750 = vpow2.f32 %v3108_v53  ;;  %v4715_v48 = vld [vmem:[%s5259_s3 + $0x4c] ss:$12 sps:$4 sm:$0xff]   ;;  %v4728_v50 = vld [vmem:[%s5259_s3 + $0x50] ss:$12 sps:$4 sm:$0xff]  }
 0x348   : > { %3752 = vpow2.f32 %v3109_v39  ;;  %v4734_v52 = vld [vmem:[%s5259_s3 + $0x64] ss:$12 sps:$4 sm:$0xff]   ;;  %v4741_v53 = vld [vmem:[%s5259_s3 + $0x60] ss:$12 sps:$4 sm:$0xff]   ;;  %v4747_v39 = vld [vmem:[%s5259_s3 + $0x68] ss:$12 sps:$4 sm:$0xff]  }
 0x349   : > { %3754 = vpow2.f32 %v3110_v60  ;;  %v4753_v60 = vld [vmem:[%s5259_s3 + $0x7c] ss:$12 sps:$4 sm:$0xff]  }
 0x34f   : > { %v3749_v19 = vpop.eup %3748 }
 0x350   : > { %v1511_v3 = vadd.f32 1.0, %v3749_v19  ;;  %v4760_v19 = vld [vmem:[%s5259_s3 + $0x78] ss:$12 sps:$4 sm:$0xff]  }
 0x351   : > { %v3751_v47 = vpop.eup %3750 }
 0x352   : > { %3756 = vrcp.f32 %v1511_v3  ;;  %v1512_v6 = vadd.f32 1.0, %v3751_v47  ;;  %v3753_v1 = vpop.eup %3752  ;;  %v4767_v3 = vld [vmem:[%s5259_s3 + $0x94] ss:$12 sps:$4 sm:$0xff]   ;;  %v4774_v47 = vld [vmem:[%s5259_s3 + $0x90] ss:$12 sps:$4 sm:$0xff]  }
 0x353   : > { %v3755_v58 = vpop.eup %3754  ;;  %v1527_v17 = vadd.f32 1.0, %v3753_v1 }
 0x354   : > { %3758 = vrcp.f32 %v1512_v6  ;;  %v1528_v26 = vadd.f32 1.0, %v3755_v58  ;;  %v1642_v6 = vunpack.c.l.bf16 %v4493_v27  ;;  %v1658_v58 = vunpack.c.l.bf16 %v4497_v36 }
 0x355   : > { %3760 = vrcp.f32 %v1527_v17 }
 0x356   : > { %3762 = vrcp.f32 %v1528_v26 }
 0x35c   : > { %v3757_v12 = vpop.eup %3756 }
 0x35d   : > { %v1535_v11 = vmul.f32 %v3757_v12, %v1533_v14  ;;  %v1643_v12 = vunpack.c.h.bf16 %v4493_v27 }
 0x35e   : > { %v3759_v23 = vpop.eup %3758 }
 0x35f   : > { %v1539_v32 = vadd.f32 %v1537_v0, %v1535_v11  ;;  %v1536_v30 = vmul.f32 %v3759_v23, %v1534_v24  ;;  %v3761_v42 = vpop.eup %3760 }
 0x360   : > { %v3763_v15 = vpop.eup %3762  ;;  %v1543_v9 = vsub.f32 1.0, %v3761_v42  ;;  %v1547_v31 = vmul.f32 %v3761_v42, %v4597_v4  ;;  %v4668_v4 = vld [vmem:[%s5259_s3 + $0x8] ss:$12 sps:$4 sm:$0xff]  }
 0x361   : > { %3764 = vtanh.f32 %v1539_v32  ;;  %v1540_v7 = vadd.f32 %v1538_v25, %v1536_v30  ;;  %v1544_v18 = vsub.f32 1.0, %v3763_v15  ;;  %v1548_v35 = vmul.f32 %v3763_v15, %v4599_v21  ;;  %v4674_v21 = vld [vmem:[%s5259_s3 + $0x1c] ss:$12 sps:$4 sm:$0xff]  }
 0x363   : > { %3766 = vtanh.f32 %v1540_v7 }
 0x36b   : > { %v3765_v5 = vpop.eup %3764 }
 0x36c   : > { %v1545_v29 = vmul.f32 %v3765_v5, %v1543_v9 }
 0x36d   : > { %v3767_v33 = vpop.eup %3766 }
 0x36e   : > { %v1546_v34 = vmul.f32 %v3767_v33, %v1544_v18  ;;  %v4653_v37 = vadd.f32 %v1547_v31, %v1545_v29 }
 0x370   : > { %v4655_v10 = vadd.f32 %v1548_v35, %v1546_v34 }
 0x372   : > { %v1557_v38 = vpack.c.bf16 %v4655_v10, %v4653_v37 }
 0x374   : > { %1591 = vmatmul.mubr.bf16.vlgmr.msra.gmra.mrb[28].mxu1 %v1557_v38  ;;  %3412 = vmatmul.mubr.bf16.vlgmr.msra.gmra.mrb[44].mxu0 %v1557_v38  ;;  %v1678_v38 = vunpack.c.l.bf16 %v4463_v8 }
 0x375   : > { %1700 = vmatpush1.bf16.msra.mxu1 %v4662_v40  ;;  %3416 = vmatpush3.bf16.msra.mxu0 %v4668_v4 }
 0x376   : > { %1701 = vmatprep.subr.bf16.mxu1 %v4674_v21  ;;  %3417 = vmatprep.subr.bf16.mxu0 %v5300_v61 }
 0x377   : > { %1731 = vmatprep.mubr.bf16.mxu1 %v5301_v63  ;;  %3431 = vmatprep.mubr.msk.bf16.mxu0 %vm4011_vm0, %v5300_v61 }
 0x379   : > { %1702 = vmatpush1.bf16.msra.mxu1 %v4684_v41  ;;  %3418 = vmatpush3.bf16.msra.mxu0 %v4690_v43 }
 0x37a   : > { %1703 = vmatprep.subr.bf16.mxu1 %v4696_v44  ;;  %3419 = vmatprep.subr.bf16.mxu0 %v5300_v61 }
 0x37d   : > { %1704 = vmatpush1.bf16.msra.mxu1 %v4703_v45  ;;  %3420 = vmatpush3.bf16.msra.mxu0 %v4709_v46 }
 0x37e   : > { %1705 = vmatprep.subr.bf16.mxu1 %v4715_v48  ;;  %3421 = vmatprep.subr.bf16.mxu0 %v5300_v61 }
 0x381   : > { %1706 = vmatpush1.bf16.msra.mxu1 %v4722_v49  ;;  %3422 = vmatpush3.bf16.msra.mxu0 %v4728_v50 }
 0x382   : > { %1707 = vmatprep.subr.bf16.mxu1 %v4734_v52  ;;  %3423 = vmatprep.subr.bf16.mxu0 %v5300_v61 }
 0x385   : > { %1708 = vmatpush1.bf16.msra.mxu1 %v4741_v53  ;;  %3424 = vmatpush3.bf16.msra.mxu0 %v4747_v39 }
 0x386   : > { %1709 = vmatprep.subr.bf16.mxu1 %v4753_v60  ;;  %3425 = vmatprep.subr.bf16.mxu0 %v5300_v61 }
 0x389   : > { %1710 = vmatpush1.bf16.msra.mxu1 %v4760_v19  ;;  %3426 = vmatpush3.bf16.msra.mxu0 %v4350_v54  ;;  %v4781_v54 = vld [vmem:[%s5259_s3 + $0xac] ss:$12 sps:$4 sm:$0xff]  }
 0x38a   : > { %1711 = vmatprep.subr.bf16.mxu1 %v4767_v3  ;;  %3427 = vmatprep.subr.bf16.mxu0 %v5300_v61 }
 0x38d   : > { %1712 = vmatpush1.bf16.msra.mxu1 %v4774_v47  ;;  %3428 = vmatpush3.bf16.msra.mxu0 %v4363_v56 }
 0x38e   : > { %1713 = vmatprep.subr.bf16.mxu1 %v4781_v54  ;;  %3429 = vmatprep.subr.bf16.mxu0 %v5300_v61 }
 0x391   : > { %1714 = vmatpush1.bf16.msra.mxu1 %v4356_v55  ;;  %3430 = vmatpush3.bf16.msra.mxu0 %v4373_v57  ;;  %v1659_v57 = vunpack.c.h.bf16 %v4497_v36 }
 0x392   : > { %1840 = vmatprep.subr.bf16.mxu1 %v4639_v28  ;;  %3435 = vmatprep.subr.bf16.mxu0 %v5300_v61 }
 0x447   : > { %v1592_v56 = vpop.f32.mrb[28].mxu1  ;;  %v1635_v1 = vpop.f32.mrb[44].mxu0 }
 0x448   : > { %v1644_v17 = vadd.f32 %v1642_v6, %v1592_v56  ;;  %v1594_v14 = vpop.f32.mrb[29].mxu1  ;;  %v3413_v26 = vpop.f32.mrb[45].mxu0  ;;  %v1674_v33 = vadd.f32 %v4540_v22, %v1635_v1 }
 0x449   : > { %v1660_v0 = vadd.f32 %v1658_v58, %v1594_v14  ;;  %v1596_v11 = vpop.f32.mrb[30].mxu1  ;;  %v1638_v55 = vpop.f32.mrb[46].mxu0 }
 0x44a   : > { %v3111_v24 = vmul.f32 -1.442695, %v1644_v17  ;;  %v1645_v23 = vadd.f32 %v1643_v12, %v1596_v11  ;;  %v1598_v25 = vpop.f32.mrb[31].mxu1  ;;  %v3414_v32 = vpop.f32.mrb[47].mxu0  ;;  %v1675_v56 = vadd.f32 %v4540_v22, %v1638_v55  ;;  %v1679_v17 = vunpack.c.h.bf16 %v4463_v8 }
 0x44b   : > { %v1661_v30 = vadd.f32 %v1659_v57, %v1598_v25  ;;  %v3113_v42 = vmul.f32 -1.442695, %v1660_v0 }
 0x44c   : > { %3768 = vpow2.f32 %v3111_v24  ;;  %v3112_v7 = vmul.f32 -1.442695, %v1645_v23 }
 0x44d   : > { %v3114_v15 = vmul.f32 -1.442695, %v1661_v30 }
 0x44e   : > { %3770 = vpow2.f32 %v3112_v7 }
 0x44f   : > { %3772 = vpow2.f32 %v3113_v42 }
 0x450   : > { %3774 = vpow2.f32 %v3114_v15  ;;  %v4849_v15 = vld [vmem:[%s5259_s3 + $0xa8] ss:$12 sps:$4 sm:$0xff]  }
 0x456   : > { %v3769_v9 = vpop.eup %3768 }
 0x457   : > { %v1652_v5 = vadd.f32 1.0, %v3769_v9  ;;  %v4855_v9 = vld [vmem:[%s5259_s3 + $0xb0] ss:$12 sps:$4 sm:$0xff]  }
 0x458   : > { %v3771_v27 = vpop.eup %3770 }
 0x459   : > { %3776 = vrcp.f32 %v1652_v5  ;;  %v1653_v18 = vadd.f32 1.0, %v3771_v27  ;;  %v3773_v29 = vpop.eup %3772  ;;  %v1783_v5 = vunpack.c.l.bf16 %v4509_v62 }
 0x45a   : > { %v3775_v36 = vpop.eup %3774  ;;  %v1668_v31 = vadd.f32 1.0, %v3773_v29  ;;  %v1799_v29 = vunpack.c.l.bf16 %v4511_v20 }
 0x45b   : > { %3778 = vrcp.f32 %v1653_v18  ;;  %v1669_v34 = vadd.f32 1.0, %v3775_v36 }
 0x45c   : > { %3780 = vrcp.f32 %v1668_v31 }
 0x45d   : > { %3782 = vrcp.f32 %v1669_v34  ;;  %v1784_v34 = vunpack.c.h.bf16 %v4509_v62 }
 0x463   : > { %v3777_v35 = vpop.eup %3776 }
 0x464   : > { %v1676_v6 = vmul.f32 %v3777_v35, %v1674_v33 }
 0x465   : > { %v3779_v58 = vpop.eup %3778 }
 0x466   : > { %v1680_v14 = vadd.f32 %v1678_v38, %v1676_v6  ;;  %v1677_v26 = vmul.f32 %v3779_v58, %v1675_v56  ;;  %v3781_v0 = vpop.eup %3780  ;;  %v1800_v56 = vunpack.c.h.bf16 %v4511_v20 }
 0x467   : > { %v3783_v11 = vpop.eup %3782  ;;  %v1684_v1 = vsub.f32 1.0, %v3781_v0  ;;  %v1688_v25 = vmul.f32 %v3781_v0, %v4653_v37  ;;  %v4832_v37 = vld [vmem:[%s5259_s3 + $0x80] ss:$12 sps:$4 sm:$0xff]  }
 0x468   : > { %3784 = vtanh.f32 %v1680_v14  ;;  %v1681_v12 = vadd.f32 %v1679_v17, %v1677_v26  ;;  %v1685_v24 = vsub.f32 1.0, %v3783_v11  ;;  %v1689_v55 = vmul.f32 %v3783_v11, %v4655_v10  ;;  %v4841_v10 = vld [vmem:[%s5259_s3 + $0x98] ss:$12 sps:$4 sm:$0xff]  }
 0x46a   : > { %3786 = vtanh.f32 %v1681_v12 }
 0x472   : > { %v3785_v57 = vpop.eup %3784 }
 0x473   : > { %v1686_v23 = vmul.f32 %v3785_v57, %v1684_v1 }
 0x474   : > { %v3787_v32 = vpop.eup %3786 }
 0x475   : > { %v1687_v30 = vmul.f32 %v3787_v32, %v1685_v24  ;;  %v4799_v7 = vadd.f32 %v1688_v25, %v1686_v23 }
 0x477   : > { %v4801_v8 = vadd.f32 %v1689_v55, %v1687_v30 }
 0x479   : > { %v1698_v42 = vpack.c.bf16 %v4801_v8, %v4799_v7 }
 0x47b   : > { %1732 = vmatmul.mubr.bf16.vlgmr.msra.gmra.mrb[32].mxu1 %v1698_v42  ;;  %3432 = vmatmul.mubr.bf16.vlgmr.msra.gmra.mrb[48].mxu0 %v1698_v42 }
 0x47c   : > { %1841 = vmatpush1.bf16.msra.mxu1 %v4662_v40  ;;  %3436 = vmatpush3.bf16.msra.mxu0 %v4668_v4 }
 0x47d   : > { %1842 = vmatprep.subr.bf16.mxu1 %v4674_v21  ;;  %3437 = vmatprep.subr.bf16.mxu0 %v5300_v61 }
 0x47e   : > { %1872 = vmatprep.mubr.bf16.mxu1 %v5301_v63  ;;  %3451 = vmatprep.mubr.msk.bf16.mxu0 %vm4011_vm0, %v5300_v61 }
 0x480   : > { %1843 = vmatpush1.bf16.msra.mxu1 %v4684_v41  ;;  %3438 = vmatpush3.bf16.msra.mxu0 %v4690_v43 }
 0x481   : > { %1844 = vmatprep.subr.bf16.mxu1 %v4696_v44  ;;  %3439 = vmatprep.subr.bf16.mxu0 %v5300_v61 }
 0x484   : > { %1845 = vmatpush1.bf16.msra.mxu1 %v4703_v45  ;;  %3440 = vmatpush3.bf16.msra.mxu0 %v4709_v46 }
 0x485   : > { %1846 = vmatprep.subr.bf16.mxu1 %v4715_v48  ;;  %3441 = vmatprep.subr.bf16.mxu0 %v5300_v61 }
 0x488   : > { %1847 = vmatpush1.bf16.msra.mxu1 %v4722_v49  ;;  %3442 = vmatpush3.bf16.msra.mxu0 %v4728_v50 }
 0x489   : > { %1848 = vmatprep.subr.bf16.mxu1 %v4734_v52  ;;  %3443 = vmatprep.subr.bf16.mxu0 %v5300_v61 }
 0x48c   : > { %1849 = vmatpush1.bf16.msra.mxu1 %v4741_v53  ;;  %3444 = vmatpush3.bf16.msra.mxu0 %v4747_v39 }
 0x48d   : > { %1850 = vmatprep.subr.bf16.mxu1 %v4753_v60  ;;  %3445 = vmatprep.subr.bf16.mxu0 %v5300_v61 }
 0x490   : > { %1851 = vmatpush1.bf16.msra.mxu1 %v4760_v19  ;;  %3446 = vmatpush3.bf16.msra.mxu0 %v4832_v37 }
 0x491   : > { %1852 = vmatprep.subr.bf16.mxu1 %v4767_v3  ;;  %3447 = vmatprep.subr.bf16.mxu0 %v5300_v61 }
 0x494   : > { %1853 = vmatpush1.bf16.msra.mxu1 %v4774_v47  ;;  %3448 = vmatpush3.bf16.msra.mxu0 %v4841_v10 }
 0x495   : > { %1854 = vmatprep.subr.bf16.mxu1 %v4781_v54  ;;  %3449 = vmatprep.subr.bf16.mxu0 %v5300_v61 }
 0x498   : > { %1855 = vmatpush1.bf16.msra.mxu1 %v4849_v15  ;;  %3450 = vmatpush3.bf16.msra.mxu0 %v4855_v9 }
 0x499   : > { %1981 = vmatprep.subr.bf16.mxu1 %v4639_v28  ;;  %3455 = vmatprep.subr.bf16.mxu0 %v5300_v61 }
 0x54e   : > { %v1733_v27 = vpop.f32.mrb[32].mxu1  ;;  %v1776_v18 = vpop.f32.mrb[48].mxu0 }
 0x54f   : > { %v1785_v36 = vadd.f32 %v1783_v5, %v1733_v27  ;;  %v1735_v31 = vpop.f32.mrb[33].mxu1  ;;  %v3433_v33 = vpop.f32.mrb[49].mxu0  ;;  %v1815_v30 = vadd.f32 %v4540_v22, %v1776_v18  ;;  %v1819_v5 = vunpack.c.l.bf16 %v4483_v59 }
 0x550   : > { %v1801_v35 = vadd.f32 %v1799_v29, %v1735_v31  ;;  %v1737_v38 = vpop.f32.mrb[34].mxu1  ;;  %v1779_v6 = vpop.f32.mrb[50].mxu0  ;;  %v1820_v31 = vunpack.c.h.bf16 %v4483_v59 }
 0x551   : > { %v3115_v58 = vmul.f32 -1.442695, %v1785_v36  ;;  %v1786_v17 = vadd.f32 %v1784_v34, %v1737_v38  ;;  %v1739_v14 = vpop.f32.mrb[35].mxu1  ;;  %v3434_v26 = vpop.f32.mrb[51].mxu0  ;;  %v1816_v29 = vadd.f32 %v4540_v22, %v1779_v6 }
 0x552   : > { %v1802_v12 = vadd.f32 %v1800_v56, %v1739_v14  ;;  %v3117_v11 = vmul.f32 -1.442695, %v1801_v35 }
 0x553   : > { %3788 = vpow2.f32 %v3115_v58  ;;  %v3116_v0 = vmul.f32 -1.442695, %v1786_v17 }
 0x554   : > { %v3118_v1 = vmul.f32 -1.442695, %v1802_v12 }
 0x555   : > { %3790 = vpow2.f32 %v3116_v0 }
 0x556   : > { %3792 = vpow2.f32 %v3117_v11 }
 0x557   : > { %3794 = vpow2.f32 %v3118_v1 }
 0x55d   : > { %v3789_v57 = vpop.eup %3788 }
 0x55e   : > { %v1793_v24 = vadd.f32 1.0, %v3789_v57 }
 0x55f   : > { %v3791_v62 = vpop.eup %3790 }
 0x560   : > { %3796 = vrcp.f32 %v1793_v24  ;;  %v1794_v23 = vadd.f32 1.0, %v3791_v62  ;;  %v3793_v25 = vpop.eup %3792  ;;  %v1940_v24 = vunpack.c.l.bf16 %v4519_v13 }
 0x561   : > { %v3795_v20 = vpop.eup %3794  ;;  %v1809_v32 = vadd.f32 1.0, %v3793_v25 }
 0x562   : > { %3798 = vrcp.f32 %v1794_v23  ;;  %v1810_v55 = vadd.f32 1.0, %v3795_v20  ;;  %v1925_v20 = vunpack.c.h.bf16 %v4517_v2 }
 0x563   : > { %3800 = vrcp.f32 %v1809_v32 }
 0x564   : > { %3802 = vrcp.f32 %v1810_v55 }
 0x56a   : > { %v3797_v42 = vpop.eup %3796 }
 0x56b   : > { %v1817_v27 = vmul.f32 %v3797_v42, %v1815_v30  ;;  %v1941_v42 = vunpack.c.h.bf16 %v4519_v13 }
 0x56c   : > { %v3799_v36 = vpop.eup %3798 }
 0x56d   : > { %v1821_v33 = vadd.f32 %v1819_v5, %v1817_v27  ;;  %v1818_v34 = vmul.f32 %v3799_v36, %v1816_v29  ;;  %v3801_v38 = vpop.eup %3800 }
 0x56e   : > { %v3803_v56 = vpop.eup %3802  ;;  %v1825_v18 = vsub.f32 1.0, %v3801_v38  ;;  %v1829_v26 = vmul.f32 %v3801_v38, %v4799_v7  ;;  %v1924_v7 = vunpack.c.l.bf16 %v4517_v2 }
 0x56f   : > { %3804 = vtanh.f32 %v1821_v33  ;;  %v1822_v35 = vadd.f32 %v1820_v31, %v1818_v34  ;;  %v1826_v17 = vsub.f32 1.0, %v3803_v56  ;;  %v1830_v6 = vmul.f32 %v3803_v56, %v4801_v8 }
 0x571   : > { %3806 = vtanh.f32 %v1822_v35 }
 0x579   : > { %v3805_v58 = vpop.eup %3804 }
 0x57a   : > { %v1827_v14 = vmul.f32 %v3805_v58, %v1825_v18 }
 0x57b   : > { %v3807_v12 = vpop.eup %3806 }
 0x57c   : > { %v1828_v0 = vmul.f32 %v3807_v12, %v1826_v17  ;;  %v4870_v11 = vadd.f32 %v1829_v26, %v1827_v14  ;;  %v1960_v12 = vunpack.c.l.bf16 %v4479_v51 }
 0x57e   : > { %v4872_v59 = vadd.f32 %v1830_v6, %v1828_v0 }
 0x580   : > { %v1839_v1 = vpack.c.bf16 %v4872_v59, %v4870_v11 }
 0x582   : > { %1873 = vmatmul.mubr.bf16.vlgmr.msra.gmra.mrb[36].mxu1 %v1839_v1  ;;  %3452 = vmatmul.mubr.bf16.vlgmr.msra.gmra.mrb[52].mxu0 %v1839_v1 }
 0x583   : > { %1982 = vmatpush1.bf16.msra.mxu1 %v4662_v40  ;;  %3456 = vmatpush3.bf16.msra.mxu0 %v4668_v4 }
 0x584   : > { %1983 = vmatprep.subr.bf16.mxu1 %v4674_v21  ;;  %3457 = vmatprep.subr.bf16.mxu0 %v5300_v61 }
 0x585   : > { %2013 = vmatprep.mubr.bf16.mxu1 %v5301_v63  ;;  %3471 = vmatprep.mubr.msk.bf16.mxu0 %vm4011_vm0, %v5300_v61 }
 0x587   : > { %1984 = vmatpush1.bf16.msra.mxu1 %v4684_v41  ;;  %3458 = vmatpush3.bf16.msra.mxu0 %v4690_v43 }
 0x588   : > { %1985 = vmatprep.subr.bf16.mxu1 %v4696_v44  ;;  %3459 = vmatprep.subr.bf16.mxu0 %v5300_v61 }
 0x58b   : > { %1986 = vmatpush1.bf16.msra.mxu1 %v4703_v45  ;;  %3460 = vmatpush3.bf16.msra.mxu0 %v4709_v46 }
 0x58c   : > { %1987 = vmatprep.subr.bf16.mxu1 %v4715_v48  ;;  %3461 = vmatprep.subr.bf16.mxu0 %v5300_v61 }
 0x58f   : > { %1988 = vmatpush1.bf16.msra.mxu1 %v4722_v49  ;;  %3462 = vmatpush3.bf16.msra.mxu0 %v4728_v50 }
 0x590   : > { %1989 = vmatprep.subr.bf16.mxu1 %v4734_v52  ;;  %3463 = vmatprep.subr.bf16.mxu0 %v5300_v61 }
 0x593   : > { %1990 = vmatpush1.bf16.msra.mxu1 %v4741_v53  ;;  %3464 = vmatpush3.bf16.msra.mxu0 %v4747_v39 }
 0x594   : > { %1991 = vmatprep.subr.bf16.mxu1 %v4753_v60  ;;  %3465 = vmatprep.subr.bf16.mxu0 %v5300_v61 }
 0x597   : > { %1992 = vmatpush1.bf16.msra.mxu1 %v4760_v19  ;;  %3466 = vmatpush3.bf16.msra.mxu0 %v4832_v37 }
 0x598   : > { %1993 = vmatprep.subr.bf16.mxu1 %v4767_v3  ;;  %3467 = vmatprep.subr.bf16.mxu0 %v5300_v61 }
 0x59b   : > { %1994 = vmatpush1.bf16.msra.mxu1 %v4774_v47  ;;  %3468 = vmatpush3.bf16.msra.mxu0 %v4841_v10 }
 0x59c   : > { %1995 = vmatprep.subr.bf16.mxu1 %v4781_v54  ;;  %3469 = vmatprep.subr.bf16.mxu0 %v5300_v61 }
 0x59f   : > { %1996 = vmatpush1.bf16.msra.mxu1 %v4849_v15  ;;  %3470 = vmatpush3.bf16.msra.mxu0 %v4855_v9 }
 0x5a0   : > { %2122 = vmatprep.subr.bf16.mxu1 %v4639_v28  ;;  %3475 = vmatprep.subr.bf16.mxu0 %v5300_v61 }
 0x655   : > { %v1874_v8 = vpop.f32.mrb[36].mxu1  ;;  %v1917_v57 = vpop.f32.mrb[52].mxu0 }
 0x656   : > { %v1926_v62 = vadd.f32 %v1924_v7, %v1874_v8  ;;  %v1876_v23 = vpop.f32.mrb[37].mxu1  ;;  %v3453_v25 = vpop.f32.mrb[53].mxu0  ;;  %v1956_v17 = vadd.f32 %v4540_v22, %v1917_v57  ;;  %v1961_v7 = vunpack.c.h.bf16 %v4479_v51 }
 0x657   : > { %v1942_v32 = vadd.f32 %v1940_v24, %v1876_v23  ;;  %v1878_v30 = vpop.f32.mrb[38].mxu1  ;;  %v1920_v55 = vpop.f32.mrb[54].mxu0 }
 0x658   : > { %v3119_v5 = vmul.f32 -1.442695, %v1926_v62  ;;  %v1927_v28 = vadd.f32 %v1925_v20, %v1878_v30  ;;  %v1880_v27 = vpop.f32.mrb[39].mxu1  ;;  %v3454_v29 = vpop.f32.mrb[55].mxu0  ;;  %v1957_v6 = vadd.f32 %v4540_v22, %v1920_v55 }
 0x659   : > { %v1943_v36 = vadd.f32 %v1941_v42, %v1880_v27  ;;  %v3121_v33 = vmul.f32 -1.442695, %v1942_v32 }
 0x65a   : > { %3808 = vpow2.f32 %v3119_v5  ;;  %v3120_v31 = vmul.f32 -1.442695, %v1927_v28 }
 0x65b   : > { %v3122_v34 = vmul.f32 -1.442695, %v1943_v36  ;;  %v4967_v36 = vld [vmem:[%s5261_s5] ss:$0 sm:$0xff] }
 0x65c   : > { %3810 = vpow2.f32 %v3120_v31 }
 0x65d   : > { %3812 = vpow2.f32 %v3121_v33 }
 0x65e   : > { %3814 = vpow2.f32 %v3122_v34 }
 0x664   : > { %v3809_v35 = vpop.eup %3808 }
 0x665   : > { %v1934_v38 = vadd.f32 1.0, %v3809_v35  ;;  %v5303_v35 = vld [vmem:[#allocation13_spill] sm:$0xff] }
 0x666   : > { %v3811_v2 = vpop.eup %3810 }
 0x667   : > { %3816 = vrcp.f32 %v1934_v38  ;;  %v1935_v56 = vadd.f32 1.0, %v3811_v2  ;;  %v3813_v18 = vpop.eup %3812  ;;  %v2101_v38 = vunpack.c.l.bf16 %v5303_v35 }
 0x668   : > { %v3815_v13 = vpop.eup %3814  ;;  %v1950_v58 = vadd.f32 1.0, %v3813_v18 }
 0x669   : > { %3818 = vrcp.f32 %v1935_v56  ;;  %v1951_v14 = vadd.f32 1.0, %v3815_v13  ;;  %v2102_v13 = vunpack.c.h.bf16 %v5303_v35 }
 0x66a   : > { %3820 = vrcp.f32 %v1950_v58 }
 0x66b   : > { %3822 = vrcp.f32 %v1951_v14 }
 0x671   : > { %v3817_v26 = vpop.eup %3816 }
 0x672   : > { %v1958_v0 = vmul.f32 %v3817_v26, %v1956_v17 }
 0x673   : > { %v3819_v1 = vpop.eup %3818 }
 0x674   : > { %v1962_v8 = vadd.f32 %v1960_v12, %v1958_v0  ;;  %v1959_v24 = vmul.f32 %v3819_v1, %v1957_v6  ;;  %v3821_v23 = vpop.eup %3820 }
 0x675   : > { %v3823_v25 = vpop.eup %3822  ;;  %v1966_v57 = vsub.f32 1.0, %v3821_v23  ;;  %v1970_v42 = vmul.f32 %v3821_v23, %v4870_v11 }
 0x676   : > { %3824 = vtanh.f32 %v1962_v8  ;;  %v1963_v62 = vadd.f32 %v1961_v7, %v1959_v24  ;;  %v1967_v32 = vsub.f32 1.0, %v3823_v25  ;;  %v1971_v22 = vmul.f32 %v3823_v25, %v4872_v59 }
 0x678   : > { %3826 = vtanh.f32 %v1963_v62 }
 0x680   : > { %v3825_v20 = vpop.eup %3824 }
 0x681   : > { %v1968_v30 = vmul.f32 %v3825_v20, %v1966_v57 }
 0x682   : > { %v3827_v5 = vpop.eup %3826 }
 0x683   : > { %v1969_v28 = vmul.f32 %v3827_v5, %v1967_v32  ;;  %v4921_v55 = vadd.f32 %v1970_v42, %v1968_v30  ;;  %v3613_v32 = vld [vmem:[%s5264_s8 + $0x4] ss:$8 sps:$4 sm:$0xff]   ;;  %v3611_v30 = vld [vmem:[%s5264_s8] ss:$8 sps:$4 sm:$0xff]   ;;  %v3616_v42 = vld [vmem:[%s5264_s8 + $0x14] ss:$8 sps:$4 sm:$0xff]  }
 0x684   : > { %v3614_v5 = vld [vmem:[%s5264_s8 + $0x10] ss:$8 sps:$4 sm:$0xff]  }
 0x685   : > { %v4923_v51 = vadd.f32 %v1971_v22, %v1969_v28  ;;  %v3619_v28 = vld [vmem:[%s5264_s8 + $0x24] ss:$8 sps:$4 sm:$0xff]   ;;  %v3617_v22 = vld [vmem:[%s5264_s8 + $0x20] ss:$8 sps:$4 sm:$0xff]  }
 0x687   : > { %v1980_v27 = vpack.c.bf16 %v4923_v51, %v4921_v55 }
 0x689   : > { %2014 = vmatmul.mubr.bf16.vlgmr.msra.gmra.mrb[40].mxu1 %v1980_v27  ;;  %3472 = vmatmul.mubr.bf16.vlgmr.msra.gmra.mrb[56].mxu0 %v1980_v27  ;;  %v3625_v27 = vld [vmem:[%s5264_s8 + $0x44] ss:$8 sps:$4 sm:$0xff]  }
 0x68a   : > { %2123 = vmatpush1.bf16.msra.mxu1 %v4662_v40  ;;  %3476 = vmatpush3.bf16.msra.mxu0 %v4668_v4  ;;  %v2065_v40 = vunpack.c.l.bf16 %v4525_v16 }
 0x68b   : > { %2124 = vmatprep.subr.bf16.mxu1 %v4674_v21  ;;  %3477 = vmatprep.subr.bf16.mxu0 %v5300_v61 }
 0x68c   : > { %2154 = vmatprep.mubr.bf16.mxu1 %v5301_v63  ;;  %3491 = vmatprep.mubr.msk.bf16.mxu0 %vm4011_vm0, %v5300_v61 }
 0x68e   : > { %2125 = vmatpush1.bf16.msra.mxu1 %v4684_v41  ;;  %3478 = vmatpush3.bf16.msra.mxu0 %v4690_v43  ;;  %v5302_v41 = vld [vmem:[#allocation14_spill] sm:$0xff] }
 0x68f   : > { %2126 = vmatprep.subr.bf16.mxu1 %v4696_v44  ;;  %3479 = vmatprep.subr.bf16.mxu0 %v5300_v61  ;;  %v2081_v43 = vunpack.c.l.bf16 %v5302_v41 }
 0x692   : > { %2127 = vmatpush1.bf16.msra.mxu1 %v4703_v45  ;;  %3480 = vmatpush3.bf16.msra.mxu0 %v4709_v46 }
 0x693   : > { %2128 = vmatprep.subr.bf16.mxu1 %v4715_v48  ;;  %3481 = vmatprep.subr.bf16.mxu0 %v5300_v61  ;;  %v2066_v48 = vunpack.c.h.bf16 %v4525_v16 }
 0x696   : > { %2129 = vmatpush1.bf16.msra.mxu1 %v4722_v49  ;;  %3482 = vmatpush3.bf16.msra.mxu0 %v4728_v50 }
 0x697   : > { %2130 = vmatprep.subr.bf16.mxu1 %v4734_v52  ;;  %3483 = vmatprep.subr.bf16.mxu0 %v5300_v61 }
 0x69a   : > { %2131 = vmatpush1.bf16.msra.mxu1 %v4741_v53  ;;  %3484 = vmatpush3.bf16.msra.mxu0 %v4747_v39 }
 0x69b   : > { %2132 = vmatprep.subr.bf16.mxu1 %v4753_v60  ;;  %3485 = vmatprep.subr.bf16.mxu0 %v5300_v61 }
 0x69e   : > { %2133 = vmatpush1.bf16.msra.mxu1 %v4760_v19  ;;  %3486 = vmatpush3.bf16.msra.mxu0 %v4832_v37 }
 0x69f   : > { %2134 = vmatprep.subr.bf16.mxu1 %v4767_v3  ;;  %3487 = vmatprep.subr.bf16.mxu0 %v5300_v61 }
 0x6a2   : > { %2135 = vmatpush1.bf16.msra.mxu1 %v4774_v47  ;;  %3488 = vmatpush3.bf16.msra.mxu0 %v4841_v10 }
 0x6a3   : > { %2136 = vmatprep.subr.bf16.mxu1 %v4781_v54  ;;  %3489 = vmatprep.subr.bf16.mxu0 %v5300_v61  ;;  %v2082_v61 = vunpack.c.h.bf16 %v5302_v41  ;;  %v3631_v41 = vld [vmem:[%s5264_s8 + $0x54] ss:$8 sps:$4 sm:$0xff]  }
 0x6a6   : > { %2137 = vmatpush1.bf16.msra.mxu1 %v4849_v15  ;;  %3490 = vmatpush3.bf16.msra.mxu0 %v4855_v9 }
 0x6a7   : > { %2540 = vmatprep.subr.bf16.mxu0 %v3613_v32 }
 0x75c   : > { %v2015_v4 = vpop.f32.mrb[40].mxu1  ;;  %v2058_v21 = vpop.f32.mrb[56].mxu0 }
 0x75d   : > { %v2067_v44 = vadd.f32 %v2065_v40, %v2015_v4  ;;  %v2017_v45 = vpop.f32.mrb[41].mxu1  ;;  %v3473_v46 = vpop.f32.mrb[57].mxu0  ;;  %v2097_v31 = vadd.f32 %v4967_v36, %v2058_v21  ;;  %v3623_v40 = vld [vmem:[%s5264_s8 + $0x40] ss:$8 sps:$4 sm:$0xff]   ;;  %v3628_v4 = vld [vmem:[%s5262_s6 + $0x4] ss:$8 sps:$4 sm:$0xff]  }
 0x75e   : > { %v2083_v49 = vadd.f32 %v2081_v43, %v2017_v45  ;;  %v2019_v50 = vpop.f32.mrb[42].mxu1  ;;  %v2061_v52 = vpop.f32.mrb[58].mxu0  ;;  %v3626_v21 = vld [vmem:[%s5262_s6] ss:$8 sps:$4 sm:$0xff]   ;;  %2367 = vmatprep.subr.bf16.mxu1 %v3628_v4  ;;  %v3629_v43 = vld [vmem:[%s5264_s8 + $0x50] ss:$8 sps:$4 sm:$0xff]  }
 0x75f   : > { %v3123_v53 = vmul.f32 -1.442695, %v2067_v44  ;;  %v2068_v39 = vadd.f32 %v2066_v48, %v2019_v50  ;;  %v2021_v60 = vpop.f32.mrb[43].mxu1  ;;  %v3474_v19 = vpop.f32.mrb[59].mxu0  ;;  %v2098_v56 = vadd.f32 %v4967_v36, %v2061_v52  ;;  %v3634_v44 = vld [vmem:[%s5262_s6 + $0x14] ss:$8 sps:$4 sm:$0xff]  }
 0x760   : > { %v2084_v3 = vadd.f32 %v2082_v61, %v2021_v60  ;;  %v3125_v54 = vmul.f32 -1.442695, %v2083_v49  ;;  %v3632_v45 = vld [vmem:[%s5262_s6 + $0x10] ss:$8 sps:$4 sm:$0xff]   ;;  %v3637_v46 = vld [vmem:[%s5264_s8 + $0x64] ss:$8 sps:$4 sm:$0xff]  }
 0x761   : > { %3828 = vpow2.f32 %v3123_v53  ;;  %v3124_v47 = vmul.f32 -1.442695, %v2068_v39  ;;  %v3635_v48 = vld [vmem:[%s5264_s8 + $0x60] ss:$8 sps:$4 sm:$0xff]   ;;  %v3640_v49 = vld [vmem:[%s5262_s6 + $0x24] ss:$8 sps:$4 sm:$0xff]  }
 0x762   : > { %v3126_v37 = vmul.f32 -1.442695, %v2084_v3  ;;  %v3638_v50 = vld [vmem:[%s5262_s6 + $0x20] ss:$8 sps:$4 sm:$0xff]   ;;  %v3643_v52 = vld [vmem:[%s5264_s8 + $0x74] ss:$8 sps:$4 sm:$0xff]  }
 0x763   : > { %3830 = vpow2.f32 %v3124_v47  ;;  %v3641_v61 = vld [vmem:[%s5264_s8 + $0x70] ss:$8 sps:$4 sm:$0xff]   ;;  %v3646_v53 = vld [vmem:[%s5262_s6 + $0x34] ss:$8 sps:$4 sm:$0xff]   ;;  %v3647_v60 = vld [vmem:[%s459_s23] sm:$0xff]   ;;  %s4012_s23 = smov [#allocation3]  }
 0x764   : > { %3832 = vpow2.f32 %v3125_v54  ;;  %v3644_v39 = vld [vmem:[%s5262_s6 + $0x30] ss:$8 sps:$4 sm:$0xff]   ;;  %v3650_v19 = vld [vmem:[%s5262_s6 + $0x44] ss:$8 sps:$4 sm:$0xff]   ;;  %v3648_v3 = vld [vmem:[%s5262_s6 + $0x40] ss:$8 sps:$4 sm:$0xff]  }
 0x765   : > { %3834 = vpow2.f32 %v3126_v37  ;;  %v3653_v47 = vld [vmem:[%s5262_s6 + $0x54] ss:$8 sps:$4 sm:$0xff]   ;;  %v3651_v54 = vld [vmem:[%s5262_s6 + $0x50] ss:$8 sps:$4 sm:$0xff]   ;;  %v3656_v37 = vld [vmem:[%s5262_s6 + $0x64] ss:$8 sps:$4 sm:$0xff]  }
 0x766   : > { %s3949_s27 = sshll.u32 %s4012_s23, 4  ;;  %s3950_s27 = int_to_ptr.vmem [resolvable:$false] %s3949_s27 }
 0x767   : > { %s3951_s20 = scalar_lea.vmem %s3950_s27, 1024  ;;  %p3952_p1 = scmp.lt.s32.totalorder %s5213_s19, %s3950_s27 }
 0x768   : > { %p3953_p2 = scmp.lt.s32.totalorder %s3951_s20, %s3945_s30 }
 0x76a   : > { %p3954_p3 = por %p3953_p2, %p3952_p1 }
 0x76b   : > { %v3829_v10 = vpop.eup %3828 }
 0x76c   : > { %v2075_v15 = vadd.f32 1.0, %v3829_v10  ;;  %v3654_v10 = vld [vmem:[%s5262_s6 + $0x60] ss:$8 sps:$4 sm:$0xff]   ;;  %p3955_p4 = pnand %p3954_p3, %p3948_p0 }
 0x76d   : > { %v3831_v16 = vpop.eup %3830 }
 0x76e   : > { %3836 = vrcp.f32 %v2075_v15  ;;  %v2076_v9 = vadd.f32 1.0, %v3831_v16  ;;  %v3833_v11 = vpop.eup %3832  ;;  %v3659_v15 = vld [vmem:[%s5262_s6 + $0x74] ss:$8 sps:$4 sm:$0xff]   ;;  %v3657_v16 = vld [vmem:[%s5262_s6 + $0x70] ss:$8 sps:$4 sm:$0xff]  }
 0x76f   : > { %v3835_v59 = vpop.eup %3834  ;;  %v2091_v29 = vadd.f32 1.0, %v3833_v11 }
 0x770   : > { %3838 = vrcp.f32 %v2076_v9  ;;  %v2092_v33 = vadd.f32 1.0, %v3835_v59  ;;  %v5304_v9 = vld [vmem:[#allocation15_spill] sm:$0xff] }
 0x771   : > { %3840 = vrcp.f32 %v2091_v29  ;;  %v2206_v11 = vunpack.c.l.bf16 %v5304_v9 }
 0x772   : > { %3842 = vrcp.f32 %v2092_v33 }
 0x778   : > { %v3837_v34 = vpop.eup %3836 }
 0x779   : > { %v2099_v2 = vmul.f32 %v3837_v34, %v2097_v31  ;;  %v5305_v31 = vld [vmem:[#allocation16_spill] sm:$0xff] }
 0x77a   : > { %v3839_v18 = vpop.eup %3838  ;;  %v2222_v33 = vunpack.c.l.bf16 %v5305_v31 }
 0x77b   : > { %v2103_v58 = vadd.f32 %v2101_v38, %v2099_v2  ;;  %v2100_v17 = vmul.f32 %v3839_v18, %v2098_v56  ;;  %v3841_v26 = vpop.eup %3840  ;;  %v2207_v2 = vunpack.c.h.bf16 %v5304_v9 }
 0x77c   : > { %v3843_v12 = vpop.eup %3842  ;;  %v2107_v0 = vsub.f32 1.0, %v3841_v26  ;;  %v2111_v8 = vmul.f32 %v3841_v26, %v4921_v55  ;;  %v3622_v55 = vld [vmem:[%s5264_s8 + $0x34] ss:$8 sps:$4 sm:$0xff]  }
 0x77d   : > { %3844 = vtanh.f32 %v2103_v58  ;;  %v2104_v14 = vadd.f32 %v2102_v13, %v2100_v17  ;;  %v2108_v1 = vsub.f32 1.0, %v3843_v12  ;;  %v2112_v23 = vmul.f32 %v3843_v12, %v4923_v51  ;;  %v3620_v51 = vld [vmem:[%s5264_s8 + $0x30] ss:$8 sps:$4 sm:$0xff]  }
 0x77e   : > { %v2223_v58 = vunpack.c.h.bf16 %v5305_v31 }
 0x77f   : > { %3846 = vtanh.f32 %v2104_v14 }
 0x787   : > { %v3845_v6 = vpop.eup %3844 }
 0x788   : > { %v2109_v7 = vmul.f32 %v3845_v6, %v2107_v0 }
 0x789   : > { %v3847_v24 = vpop.eup %3846 }
 0x78a   : > { %v2110_v62 = vmul.f32 %v3847_v24, %v2108_v1  ;;  %v4975_v25 = vadd.f32 %v2111_v8, %v2109_v7 }
 0x78c   : > { %v4977_v57 = vadd.f32 %v2112_v23, %v2110_v62 }
 0x78e   : > { %v2121_v20 = vpack.c.bf16 %v4977_v57, %v4975_v25 }
 0x790   : > { %2155 = vmatmul.mubr.bf16.vlgmr.msra.gmra.mrb[44].mxu1 %v2121_v20  ;;  %3492 = vmatmul.mubr.bf16.vlgmr.msra.gmra.mrb[60].mxu0 %v2121_v20 }
 0x791   : > { %2572 = vmatprep.mubr.bf16.mxu0 %v5301_v63  ;;  %2399 = vmatprep.mubr.bf16.mxu1 %v5301_v63 }
 0x792   : > { %2541 = vmatpush1.bf16.msra.mxu0 %v3611_v30  ;;  %2368 = vmatpush1.bf16.msra.mxu1 %v3626_v21 }
 0x793   : > { %2542 = vmatprep.subr.bf16.mxu0 %v3616_v42  ;;  %2369 = vmatprep.subr.bf16.mxu1 %v3634_v44 }
 0x796   : > { %2543 = vmatpush1.bf16.msra.mxu0 %v3614_v5  ;;  %2370 = vmatpush1.bf16.msra.mxu1 %v3632_v45 }
 0x797   : > { %2544 = vmatprep.subr.bf16.mxu0 %v3619_v28  ;;  %2371 = vmatprep.subr.bf16.mxu1 %v3640_v49 }
 0x79a   : > { %2545 = vmatpush1.bf16.msra.mxu0 %v3617_v22  ;;  %2372 = vmatpush1.bf16.msra.mxu1 %v3638_v50  ;;  %v5306_v22 = vld [vmem:[#allocation12_spill] sm:$0xff] }
 0x79b   : > { %2546 = vmatprep.subr.bf16.mxu0 %v3622_v55  ;;  %2373 = vmatprep.subr.bf16.mxu1 %v3646_v53  ;;  %v2242_v55 = vunpack.c.l.bf16 %v5306_v22  ;;  %v2243_v4 = vunpack.c.h.bf16 %v5306_v22 }
 0x79e   : > { %2547 = vmatpush1.bf16.msra.mxu0 %v3620_v51  ;;  %2374 = vmatpush1.bf16.msra.mxu1 %v3644_v39 }
 0x79f   : > { %2548 = vmatprep.subr.bf16.mxu0 %v3625_v27  ;;  %2375 = vmatprep.subr.bf16.mxu1 %v3650_v19 }
 0x7a2   : > { %2549 = vmatpush1.bf16.msra.mxu0 %v3623_v40  ;;  %2376 = vmatpush1.bf16.msra.mxu1 %v3648_v3  ;;  %v2442_v3 = vld [vmem:[%s5265_s9] sm:$0x3] }
 0x7a3   : > { %2550 = vmatprep.subr.bf16.mxu0 %v3631_v41  ;;  %2377 = vmatprep.subr.bf16.mxu1 %v3653_v47  ;;  %v5307_v47 = vld [vmem:[#allocation11_spill] sm:$0xff] }
 0x7a6   : > { %2551 = vmatpush1.bf16.msra.mxu0 %v3629_v43  ;;  %2378 = vmatpush1.bf16.msra.mxu1 %v3651_v54  ;;  %v2451_v54 = vrot.slane %v2442_v3, %v5307_v47 }
 0x7a7   : > { %2552 = vmatprep.subr.bf16.mxu0 %v3637_v46  ;;  %2379 = vmatprep.subr.bf16.mxu1 %v3656_v37 }
 0x7aa   : > { %2553 = vmatpush1.bf16.msra.mxu0 %v3635_v48  ;;  %2380 = vmatpush1.bf16.msra.mxu1 %v3654_v10 }
 0x7ab   : > { %2554 = vmatprep.subr.bf16.mxu0 %v3643_v52  ;;  %2381 = vmatprep.subr.bf16.mxu1 %v3659_v15 }
 0x7ae   : > { %2555 = vmatpush1.bf16.msra.mxu0 %v3641_v61  ;;  %2382 = vmatpush1.bf16.msra.mxu1 %v3657_v16 }
 0x7b1   : > { %2573 = vmatmul.mubr.bf16.vlgmr.msra.gmra.mrb[64].mxu0 %v3647_v60 }
 0x7b2   : > { %2898 = vmatprep.mubr.bf16.mxu0 %v5301_v63 }
 0x863   : > { %v2156_v59 = vpop.f32.mrb[44].mxu1  ;;  %v2199_v29 = vpop.f32.mrb[60].mxu0 }
 0x864   : > { %v2208_v34 = vadd.f32 %v2206_v11, %v2156_v59  ;;  %v2158_v35 = vpop.f32.mrb[45].mxu1  ;;  %v3493_v38 = vpop.f32.mrb[61].mxu0  ;;  %v2238_v42 = vadd.f32 %v4967_v36, %v2199_v29  ;;  %v5308_v59 = vld [vmem:[#allocation10_spill] sm:$0xff] }
 0x865   : > { %v2224_v56 = vadd.f32 %v2222_v33, %v2158_v35  ;;  %v2160_v18 = vpop.f32.mrb[46].mxu1  ;;  %v2202_v13 = vpop.f32.mrb[62].mxu0  ;;  %v2447_v29 = vrot.slane %v2442_v3, %v5308_v59 }
 0x866   : > { %v3127_v17 = vmul.f32 -1.442695, %v2208_v34  ;;  %v2209_v14 = vadd.f32 %v2207_v2, %v2160_v18  ;;  %v2162_v26 = vpop.f32.mrb[47].mxu1  ;;  %v3494_v12 = vpop.f32.mrb[63].mxu0  ;;  %v2239_v27 = vadd.f32 %v4967_v36, %v2202_v13  ;;  %v3662_v2 = vld [vmem:[%s5266_s10 + $0x4] ss:$8 sps:$4 sm:$0xff]  }
 0x867   : > { %v2225_v0 = vadd.f32 %v2223_v58, %v2162_v26  ;;  %v3129_v1 = vmul.f32 -1.442695, %v2224_v56  ;;  %v3660_v56 = vld [vmem:[%s5266_s10] ss:$8 sps:$4 sm:$0xff]   ;;  %2710 = vmatprep.subr.bf16.mxu1 %v3662_v2  ;;  %v3665_v18 = vld [vmem:[%s5266_s10 + $0x14] ss:$8 sps:$4 sm:$0xff]  }
 0x868   : > { %3848 = vpow2.f32 %v3127_v17  ;;  %v3128_v6 = vmul.f32 -1.442695, %v2209_v14  ;;  %v3663_v58 = vld [vmem:[%s5266_s10 + $0x10] ss:$8 sps:$4 sm:$0xff]   ;;  %v3668_v26 = vld [vmem:[%s5266_s10 + $0x24] ss:$8 sps:$4 sm:$0xff]  }
 0x869   : > { %v3130_v7 = vmul.f32 -1.442695, %v2225_v0  ;;  %v3666_v0 = vld [vmem:[%s5266_s10 + $0x20] ss:$8 sps:$4 sm:$0xff]   ;;  %v3707_v2 = vld [vmem:[%s5268_s12 + $0x74] ss:$8 sps:$4 sm:$0xff]  }
 0x86a   : > { %3850 = vpow2.f32 %v3128_v6 }
 0x86b   : > { %3852 = vpow2.f32 %v3129_v1 }
 0x86c   : > { %3854 = vpow2.f32 %v3130_v7  ;;  %v3671_v7 = vld [vmem:[%s5266_s10 + $0x34] ss:$8 sps:$4 sm:$0xff]  }
 0x872   : > { %v3849_v8 = vpop.eup %3848 }
 0x873   : > { %v2216_v24 = vadd.f32 1.0, %v3849_v8  ;;  %v3669_v8 = vld [vmem:[%s5266_s10 + $0x30] ss:$8 sps:$4 sm:$0xff]  }
 0x874   : > { %v3851_v62 = vpop.eup %3850 }
 0x875   : > { %3856 = vrcp.f32 %v2216_v24  ;;  %v2217_v23 = vadd.f32 1.0, %v3851_v62  ;;  %v3853_v20 = vpop.eup %3852  ;;  %v3674_v24 = vld [vmem:[%s5266_s10 + $0x44] ss:$8 sps:$4 sm:$0xff]   ;;  %v3672_v62 = vld [vmem:[%s5266_s10 + $0x40] ss:$8 sps:$4 sm:$0xff]  }
 0x876   : > { %v3855_v32 = vpop.eup %3854  ;;  %v2232_v30 = vadd.f32 1.0, %v3853_v20  ;;  %v3675_v20 = vld [vmem:[%s5266_s10 + $0x50] ss:$8 sps:$4 sm:$0xff]  }
 0x877   : > { %3858 = vrcp.f32 %v2217_v23  ;;  %v2233_v5 = vadd.f32 1.0, %v3855_v32  ;;  %v3677_v23 = vld [vmem:[%s5266_s10 + $0x54] ss:$8 sps:$4 sm:$0xff]   ;;  %v3680_v32 = vld [vmem:[%s5266_s10 + $0x64] ss:$8 sps:$4 sm:$0xff]  }
 0x878   : > { %3860 = vrcp.f32 %v2232_v30  ;;  %v3678_v30 = vld [vmem:[%s5266_s10 + $0x60] ss:$8 sps:$4 sm:$0xff]  }
 0x879   : > { %3862 = vrcp.f32 %v2233_v5  ;;  %v3681_v5 = vld [vmem:[%s5266_s10 + $0x70] ss:$8 sps:$4 sm:$0xff]  }
 0x87f   : > { %v3857_v28 = vpop.eup %3856 }
 0x880   : > { %v2240_v51 = vmul.f32 %v3857_v28, %v2238_v42  ;;  %v3683_v42 = vld [vmem:[%s5266_s10 + $0x74] ss:$8 sps:$4 sm:$0xff]   ;;  %v2275_v28 = vld [vmem:[%s5263_s7] sm:$0x3] }
 0x881   : > { %v3859_v40 = vpop.eup %3858  ;;  %v2284_v22 = vrot.slane %v2275_v28, %v5307_v47 }
 0x882   : > { %v2244_v21 = vadd.f32 %v2242_v55, %v2240_v51  ;;  %v2241_v41 = vmul.f32 %v3859_v40, %v2239_v27  ;;  %v3861_v44 = vpop.eup %3860 }
 0x883   : > { %v3863_v45 = vpop.eup %3862  ;;  %v2248_v46 = vsub.f32 1.0, %v3861_v44  ;;  %v2252_v52 = vmul.f32 %v3861_v44, %v4975_v25  ;;  %v2280_v44 = vrot.slane %v2275_v28, %v5308_v59 }
 0x884   : > { %3864 = vtanh.f32 %v2244_v21  ;;  %v2245_v43 = vadd.f32 %v2243_v4, %v2241_v41  ;;  %v2249_v49 = vsub.f32 1.0, %v3863_v45  ;;  %v2253_v36 = vmul.f32 %v3863_v45, %v4977_v57  ;;  %v2574_v37 = vpop.f32.mrb[64].mxu0 }
 0x885   : > { %v2576_v10 = vpop.f32.mrb[65].mxu0  ;;  %v2575_v31 = vadd.f32 %v2574_v37, %v2447_v29 }
 0x886   : > { %3866 = vtanh.f32 %v2245_v43  ;;  %v2577_v15 = vadd.f32 %v2576_v10, %v2451_v54  ;;  %v2578_v25 = vpop.f32.mrb[66].mxu0  ;;  %v3686_v10 = vld [vmem:[%s5268_s12 + $0x4] ss:$8 sps:$4 sm:$0xff]  }
 0x887   : > { %v2580_v16 = vpop.f32.mrb[67].mxu0  ;;  %2866 = vmatprep.subr.bf16.mxu0 %v3686_v10 }
 0x888   : > { %v3166_v9 = vmul.f32 -1.442695, %v2577_v15  ;;  %v2581_v11 = vadd.f32 %v2580_v16, %v2451_v54  ;;  %v3684_v15 = vld [vmem:[%s5268_s12] ss:$8 sps:$4 sm:$0xff]   ;;  %v3687_v16 = vld [vmem:[%s5268_s12 + $0x10] ss:$8 sps:$4 sm:$0xff]  }
 0x889   : > { %2867 = vmatpush1.bf16.msra.mxu0 %v3684_v15 }
 0x88a   : > { %3868 = vpow2.f32 %v3166_v9  ;;  %v3167_v57 = vmul.f32 -1.442695, %v2581_v11  ;;  %v3692_v9 = vld [vmem:[%s5268_s12 + $0x24] ss:$8 sps:$4 sm:$0xff]   ;;  %v3690_v11 = vld [vmem:[%s5268_s12 + $0x20] ss:$8 sps:$4 sm:$0xff]  }
 0x88c   : > { %3870 = vpow2.f32 %v3167_v57  ;;  %v3695_v57 = vld [vmem:[%s5268_s12 + $0x34] ss:$8 sps:$4 sm:$0xff]  }
 0x88d   : > { %3872 = vtanh.f32 %v2575_v31  ;;  %v3698_v31 = vld [vmem:[%s5268_s12 + $0x44] ss:$8 sps:$4 sm:$0xff]  }
 0x88e   : > { %v3865_v48 = vpop.eup %3864 }
 0x88f   : > { %v2250_v50 = vmul.f32 %v3865_v48, %v2248_v46 }
 0x890   : > { %v3867_v61 = vpop.eup %3866 }
 0x891   : > { %v2251_v53 = vmul.f32 %v3867_v61, %v2249_v49  ;;  %v2254_v39 = vadd.f32 %v2252_v52, %v2250_v50 }
 0x893   : > { %v2255_v60 = vadd.f32 %v2253_v36, %v2251_v53 }
 0x894   : > { %v3869_v33 = vpop.eup %3868 }
 0x895   : > { %v2258_v19 = vpack.c.bf16 %v2255_v60, %v2254_v39  ;;  %v2591_v34 = vadd.f32 1.0, %v3869_v33  ;;  %v3699_v33 = vld [vmem:[%s5268_s12 + $0x50] ss:$8 sps:$4 sm:$0xff]  }
 0x896   : > { %v3871_v35 = vpop.eup %3870 }
 0x897   : > { %2400 = vmatmul.mubr.bf16.vlgmr.msra.gmra.mrb[48].mxu1 %v2258_v19  ;;  %v2592_v38 = vadd.f32 1.0, %v3871_v35  ;;  %v3873_v13 = vpop.eup %3872  ;;  %v3704_v35 = vld [vmem:[%s5268_s12 + $0x64] ss:$8 sps:$4 sm:$0xff]  }
 0x898   : > { %2742 = vmatprep.mubr.bf16.mxu1 %v5301_v63  ;;  %v2579_v63 = vadd.f32 %v2578_v25, %v2447_v29  ;;  %2711 = vmatpush1.bf16.msra.mxu1 %v3660_v56  ;;  %v3689_v25 = vld [vmem:[%s5268_s12 + $0x14] ss:$8 sps:$4 sm:$0xff]   ;;  %v3693_v29 = vld [vmem:[%s5268_s12 + $0x30] ss:$8 sps:$4 sm:$0xff]  }
 0x899   : > { %2712 = vmatprep.subr.bf16.mxu1 %v3665_v18  ;;  %2868 = vmatprep.subr.bf16.mxu0 %v3689_v25  ;;  %v3705_v56 = vld [vmem:[%s5268_s12 + $0x70] ss:$8 sps:$4 sm:$0xff]   ;;  %v2618_v18 = vld [vmem:[%s5267_s11] sm:$0x3] }
 0x89a   : > { %3874 = vtanh.f32 %v2579_v63  ;;  %2869 = vmatpush1.bf16.msra.mxu0 %v3687_v16  ;;  %v3696_v63 = vld [vmem:[%s5268_s12 + $0x40] ss:$8 sps:$4 sm:$0xff]  }
 0x89b   : > { %3876 = vrcp.f32 %v2591_v34  ;;  %2870 = vmatprep.subr.bf16.mxu0 %v3692_v9  ;;  %v3701_v34 = vld [vmem:[%s5268_s12 + $0x54] ss:$8 sps:$4 sm:$0xff]  }
 0x89c   : > { %3878 = vrcp.f32 %v2592_v38  ;;  %2713 = vmatpush1.bf16.msra.mxu1 %v3663_v58  ;;  %v3702_v38 = vld [vmem:[%s5268_s12 + $0x60] ss:$8 sps:$4 sm:$0xff]  }
 0x89d   : > { %2714 = vmatprep.subr.bf16.mxu1 %v3668_v26 }
 0x89e   : > { %2871 = vmatpush1.bf16.msra.mxu0 %v3690_v11 }
 0x89f   : > { %2872 = vmatprep.subr.bf16.mxu0 %v3695_v57 }
 0x8a0   : > { %2715 = vmatpush1.bf16.msra.mxu1 %v3666_v0 }
 0x8a1   : > { %2716 = vmatprep.subr.bf16.mxu1 %v3671_v7  ;;  %v2623_v7 = vrot.slane %v2618_v18, %v5308_v59 }
 0x8a2   : > { %2873 = vmatpush1.bf16.msra.mxu0 %v3693_v29 }
 0x8a3   : > { %2874 = vmatprep.subr.bf16.mxu0 %v3698_v31 }
 0x8a4   : > { %v3875_v17 = vpop.eup %3874  ;;  %2717 = vmatpush1.bf16.msra.mxu1 %v3669_v8 }
 0x8a5   : > { %v3877_v14 = vpop.eup %3876  ;;  %2718 = vmatprep.subr.bf16.mxu1 %v3674_v24 }
 0x8a6   : > { %v3879_v12 = vpop.eup %3878  ;;  %v2597_v6 = vmul.f32 %v3877_v14, %v3873_v13  ;;  %2875 = vmatpush1.bf16.msra.mxu0 %v3696_v63  ;;  %v2627_v13 = vrot.slane %v2618_v18, %v5307_v47 }
 0x8a7   : > { %v2598_v1 = vmul.f32 %v3879_v12, %v3875_v17  ;;  %2876 = vmatprep.subr.bf16.mxu0 %v3701_v34 }
 0x8a8   : > { %2719 = vmatpush1.bf16.msra.mxu1 %v3672_v62 }
 0x8a9   : > { %2720 = vmatprep.subr.bf16.mxu1 %v3677_v23 }
 0x8aa   : > { %2877 = vmatpush1.bf16.msra.mxu0 %v3699_v33 }
 0x8ab   : > { %2878 = vmatprep.subr.bf16.mxu0 %v3704_v35 }
 0x8ac   : > { %2721 = vmatpush1.bf16.msra.mxu1 %v3675_v20 }
 0x8ad   : > { %2722 = vmatprep.subr.bf16.mxu1 %v3680_v32 }
 0x8ae   : > { %2879 = vmatpush1.bf16.msra.mxu0 %v3702_v38 }
 0x8af   : > { %2880 = vmatprep.subr.bf16.mxu0 %v3707_v2 }
 0x8b0   : > { %2723 = vmatpush1.bf16.msra.mxu1 %v3678_v30 }
 0x8b1   : > { %2724 = vmatprep.subr.bf16.mxu1 %v3683_v42 }
 0x8b2   : > { %2881 = vmatpush1.bf16.msra.mxu0 %v3705_v56 }
 0x8b4   : > { %2725 = vmatpush1.bf16.msra.mxu1 %v3681_v5 }
 0x96a   : > { %v2401_v55 = vpop.f32.mrb[48].mxu1 }
 0x96b   : > { %v2403_v51 = vpop.f32.mrb[49].mxu1  ;;  %v2402_v45 = vadd.f32 %v2401_v55, %v2280_v44 }
 0x96c   : > { %v2404_v27 = vadd.f32 %v2403_v51, %v2284_v22  ;;  %v2405_v40 = vpop.f32.mrb[50].mxu1 }
 0x96d   : > { %v2407_v4 = vpop.f32.mrb[51].mxu1  ;;  %v2406_v48 = vadd.f32 %v2405_v40, %v2280_v44 }
 0x96e   : > { %v3147_v21 = vmul.f32 -1.442695, %v2404_v27  ;;  %v2408_v41 = vadd.f32 %v2407_v4, %v2284_v22 }
 0x970   : > { %3880 = vpow2.f32 %v3147_v21  ;;  %v3148_v43 = vmul.f32 -1.442695, %v2408_v41 }
 0x972   : > { %3882 = vpow2.f32 %v3148_v43 }
 0x973   : > { %3884 = vtanh.f32 %v2402_v45 }
 0x97a   : > { %v3881_v46 = vpop.eup %3880 }
 0x97b   : > { %v2418_v49 = vadd.f32 1.0, %v3881_v46 }
 0x97c   : > { %v3883_v50 = vpop.eup %3882 }
 0x97d   : > { %3886 = vrcp.f32 %v2418_v49  ;;  %v2419_v52 = vadd.f32 1.0, %v3883_v50  ;;  %v3885_v61 = vpop.eup %3884 }
 0x97e   : > { %3888 = vtanh.f32 %v2406_v48 }
 0x97f   : > { %3890 = vrcp.f32 %v2419_v52 }
 0x987   : > { %v3887_v53 = vpop.eup %3886 }
 0x988   : > { %v3889_v36 = vpop.eup %3888  ;;  %v2424_v39 = vmul.f32 %v3887_v53, %v3885_v61 }
 0x989   : > { %v3891_v60 = vpop.eup %3890 }
 0x98a   : > { %v2425_v19 = vmul.f32 %v3891_v60, %v3889_v36  ;;  %v2599_v3 = vmul.f32 %v2597_v6, %v2424_v39 }
 0x98c   : > { %v2600_v54 = vmul.f32 %v2598_v1, %v2425_v19 }
 0x98e   : > { %v2601_v37 = vpack.c.bf16 %v2600_v54, %v2599_v3 }
 0x990   : > { %2743 = vmatmul.mubr.bf16.vlgmr.msra.gmra.mrb[52].mxu1 %v2601_v37 }
 0xa63   : > { %v2744_v58 = vpop.f32.mrb[52].mxu1 }
 0xa64   : > { %v2746_v17 = vpop.f32.mrb[53].mxu1  ;;  %v2745_v8 = vadd.f32 %v2744_v58, %v2623_v7 }
 0xa65   : > { %v2747_v14 = vadd.f32 %v2746_v17, %v2627_v13  ;;  %v2748_v26 = vpop.f32.mrb[54].mxu1 }
 0xa66   : > { %v2750_v12 = vpop.f32.mrb[55].mxu1  ;;  %v2749_v62 = vadd.f32 %v2748_v26, %v2623_v7 }
 0xa67   : > { %v3184_v0 = vmul.f32 -1.442695, %v2747_v14  ;;  %v2751_v6 = vadd.f32 %v2750_v12, %v2627_v13 }
 0xa69   : > { %3892 = vpow2.f32 %v3184_v0  ;;  %v3185_v1 = vmul.f32 -1.442695, %v2751_v6 }
 0xa6b   : > { %3894 = vpow2.f32 %v3185_v1 }
 0xa6c   : > { %3896 = vtanh.f32 %v2745_v8 }
 0xa73   : > { %v3893_v24 = vpop.eup %3892 }
 0xa74   : > { %v2761_v23 = vadd.f32 1.0, %v3893_v24 }
 0xa75   : > { %v3895_v20 = vpop.eup %3894 }
 0xa76   : > { %3898 = vrcp.f32 %v2761_v23  ;;  %v2762_v47 = vadd.f32 1.0, %v3895_v20  ;;  %v3897_v32 = vpop.eup %3896 }
 0xa77   : > { %3900 = vtanh.f32 %v2749_v62 }
 0xa78   : > { %3902 = vrcp.f32 %v2762_v47 }
 0xa80   : > { %v3899_v30 = vpop.eup %3898 }
 0xa81   : > { %v3901_v42 = vpop.eup %3900  ;;  %v2767_v5 = vmul.f32 %v3899_v30, %v3897_v32 }
 0xa82   : > { %v3903_v28 = vpop.eup %3902 }
 0xa83   : > { %v2768_v22 = vmul.f32 %v3903_v28, %v3901_v42 }
 0xa85   : > { %v2769_v55 = vpack.c.bf16 %v2768_v22, %v2767_v5 }
 0xa87   : > { %2899 = vmatmul.mubr.bf16.vlgmr.msra.gmra.mrb[68].mxu0 %v2769_v55 }
 0xb5a   : > { %v2900_v51 = vpop.f32.mrb[68].mxu0 }
 0xb5b   : > { %v3202_v59 = vmul.f32 -1.442695, %v2900_v51  ;;  %v2902_v27 = vpop.f32.mrb[69].mxu0 }
 0xb5c   : > { %v3203_v40 = vmul.f32 -1.442695, %v2902_v27  ;;  %v2904_v4 = vpop.f32.mrb[70].mxu0 }
 0xb5d   : > { %3904 = vpow2.f32 %v3202_v59  ;;  %v3204_v21 = vmul.f32 -1.442695, %v2904_v4  ;;  %v2906_v41 = vpop.f32.mrb[71].mxu0 }
 0xb5e   : > { %3906 = vpow2.f32 %v3203_v40  ;;  %v3205_v43 = vmul.f32 -1.442695, %v2906_v41 }
 0xb5f   : > { %3908 = vpow2.f32 %v3204_v21 }
 0xb60   : > { %3910 = vpow2.f32 %v3205_v43 }
 0xb67   : > { %v3905_v44 = vpop.eup %3904 }
 0xb68   : > { %v3907_v45 = vpop.eup %3906  ;;  %v2921_v46 = vadd.f32 1.0, %v3905_v44 }
 0xb69   : > { %v3909_v48 = vpop.eup %3908  ;;  %v2922_v49 = vadd.f32 1.0, %v3907_v45 }
 0xb6a   : > { %v3911_v50 = vpop.eup %3910  ;;  %3912 = vrcp.f32 %v2921_v46  ;;  %v2923_v52 = vadd.f32 1.0, %v3909_v48 }
 0xb6b   : > { %3914 = vrcp.f32 %v2922_v49  ;;  %v2924_v61 = vadd.f32 1.0, %v3911_v50 }
 0xb6c   : > { %3916 = vrcp.f32 %v2923_v52 }
 0xb6d   : > { %3918 = vrcp.f32 %v2924_v61 }
 0xb74   : > { %v3913_v53 = vpop.eup %3912 }
 0xb75   : > { %v3915_v36 = vpop.eup %3914  ;;  %2933 = vst [vmem:[%s449_s16] sm:$0xff] %v3913_v53 }
 0xb76   : > { %v3917_v39 = vpop.eup %3916  ;;  %2934 = vst [vmem:[%s449_s16 + $0x8] sm:$0xff] %v3915_v36 }
 0xb77   : > { %v3919_v60 = vpop.eup %3918  ;;  %2935 = vst [vmem:[%s449_s16 + $0x10] sm:$0xff] %v3917_v39 }
 0xb78   : > { %2936 = vst [vmem:[%s449_s16 + $0x18] sm:$0xff] %v3919_v60 }
 0xb79   : > { %3958 = shalt.err (!%p3955_p4)
}
 0xb7a   : > { %s3959_s24 = scalar_lea.hbm %s5211_s17, 512  ;;  %s3963_s16 = scalar_lea.hbm %s5269_s13, 1024 }
 0xb7b   : > { %p3960_p7 = scmp.ne.s32.totalorder %s5211_s17, %s3959_s24  ;;  %p3964_p10 = scmp.lt.u32.totalorder %s5211_s17, %s5269_s13 }
 0xb7c   : > { %p3965_p11 = scmp.lt.u32.totalorder %s3963_s16, %s3959_s24  ;;  %p3967_p13 = scmp.lt.u32.totalorder %s3959_s24, %s5211_s17 }
 0xb7d   : > { %p3961_p8 = pnand %p3960_p7, %p4123_p5 }
 0xb7e   : > { %p3966_p12 = por %p3965_p11, %p3964_p10 }
 0xb7f   : > { %p3962_p9 = pneg %p3961_p8 }
 0xb80   : > { %p3968_p0 = por %p3967_p13, %p3966_p12 }
 0xb82   : > { %p3969_p1 = pnand %p3968_p0, %p3962_p9 }
 0xb84   : > { %3972 = shalt.err (!%p3969_p1)
}
 0xb85   : > { %s4013_s30 = smov 256   ;;  %s4014_s23 = smov 16  }
 0xb86   : > { %3495 = dma.vmem_to_hbm [thread:$0]  (%p4123_p5), %s5213_s19, 512, %s5211_s17, %s5215_s29, %s4013_s30, %s4013_s30, %s4014_s23  }
 0xb87 PF: > { %p3501_p2 = scmp.ge.s32.totalorder %s4007_s28, 2  ;;  %s2967_s20 = sand.u32 1, %s3995_s25  }
 0xb88   : > { %s2968_s24 = scalar_lea.sflag [#allocation4], %s2967_s20 }
 0xb89   : > { %p3498_p3 = pnand %p3501_p2, %p4127_p6 }
 0xb8b   : > { %3990 = dma.done.wait (!%p3498_p3), %s2968_s24, 512  }
 0xb8c   : > { %3992 = vsyncadd (!%p3498_p3), %s2968_s24, 4294966784  ;;  %s5310_s28 = sld [smem:[#allocation7_spill]]  ;;  %s5311_s15 = sld [smem:[#allocation6_spill]] }
 0xb8d   : > { %s5312_s27 = sld [smem:[#allocation8_spill]]  ;;  %s5313_s25 = smov %s3999_s26 }
 0xb92   : > { %p23_p4 = scmp.ge.s32.totalorder %s5310_s28, 4   ;;  %s5314_s26 = smov %s5311_s15 }
 0xb94   :  { %25 = sbr.rel (!%p23_p4) target bundleno = 3 (0x3), region = 118 }
 0xb9b   :  { %2973 = vsyncpa [#allocation4], 1 }
 0xb9c   :  { %2975 = vsyncpa [#allocation4 + $0x1], 1 }

</bundles_post_ra>
